<compile_context>
chip_gen: v7x
topology: tpu7x:2x2x1
jax: 0.10.0
libtpu: 0.0.40
codegen_flags: <defaults>
</compile_context>

<pallas_src>
import math

import jax
import jax.numpy as jnp
from jax import lax
from jax.experimental import pallas as pl
from jax.experimental.pallas import tpu as pltpu


_SCALAR = jax.ShapeDtypeStruct((1, 1), jnp.float32)
_SMEM_SPEC = pl.BlockSpec(memory_space=pltpu.MemorySpace.SMEM)
_NT = (((1,), (1,)), ((), ()))       # contract last dim with last dim (NT gram)
_BLOCK_BYTES = 1 << 20               # ~1 MiB per streamed input block (v7x-safe)


def _vmem_limit_bytes():
    try:
        cap = int(pltpu.get_tpu_info().vmem_capacity_bytes)
    except Exception:
        cap = 64 * 1024 * 1024       # conservative fallback (v7x per-core VMEM)
    return max(32 * 1024 * 1024, min(100 * 1024 * 1024, (cap * 3) // 4))


_VMEM_LIMIT = _vmem_limit_bytes()


def _compiler_params():
    return pltpu.CompilerParams(
        dimension_semantics=("arbitrary", "arbitrary"),
        vmem_limit_bytes=_VMEM_LIMIT)


def _pick_hw_tile(hw, align, max_lanes):
    """Largest T with T % align == 0, hw % T == 0, T <= max_lanes; else hw."""
    if hw <= max_lanes:
        return hw
    t = (max_lanes // align) * align
    while t >= align:
        if hw % t == 0:
            return t
        t -= align
    return hw


# ----------------------------------------------------------------------------
# Fused hole / valid / TV kernel (streams over (batch, HW tiles))
# ----------------------------------------------------------------------------
def _make_image_kernel(n_out, tv_flags, B, C, H, W, T):
    HW = H * W
    n_t = HW // T
    n_tv = sum(tv_flags)
    has_carry = bool(n_tv) and n_t > 1
    inv_hv = 1.0 / float(B * C * H * W)
    inv_tw = 1.0 / float(B * C * H * (W - 1))
    inv_th = 1.0 / float(B * C * (H - 1) * W)
    w_pow2 = (W & (W - 1)) == 0

    def kernel(*args):
        mask_ref, gt_ref, inp_ref = args[0], args[1], args[2]
        out_refs = args[3:3 + n_out]
        hole_ref, valid_ref, tv_ref = args[3 + n_out:6 + n_out]
        carry_ref = args[6 + n_out] if has_carry else None

        b = pl.program_id(0)
        t = pl.program_id(1)

        @pl.when(jnp.logical_and(b == 0, t == 0))
        def _():
            hole_ref[0, 0] = 0.0
            valid_ref[0, 0] = 0.0
            tv_ref[0, 0] = 0.0

        m = mask_ref[0].astype(jnp.float32)          # (1 or C, T), broadcast below
        g = gt_ref[0].astype(jnp.float32)            # (C, T)
        x = inp_ref[0].astype(jnp.float32)           # (C, T)
        one_m = 1.0 - m

        if n_tv:
            col = lax.broadcasted_iota(jnp.int32, (C, T), 1)
            if w_pow2:
                w_ok = (col & (W - 1)) != (W - 1)    # cheap boundary mask, no modulo
            else:
                w_ok = (col % W) != (W - 1)
            h_ok = col < (T - W)                     # in-tile H-neighbour exists

        hole_acc = 0.0
        valid_acc = 0.0
        dw_acc = 0.0
        dh_acc = 0.0
        tvi = 0
        for i in range(n_out):
            o = out_refs[i][0].astype(jnp.float32)
            diff = o - g
            hole_acc += jnp.sum(jnp.abs(one_m * diff))   # exact |(1-m)*o-(1-m)*gt|
            valid_acc += jnp.sum(jnp.abs(m * diff))
            if tv_flags[i]:
                comp = m * x + one_m * o                  # composed image, reused in VMEM
                nb_w = pltpu.roll(comp, shift=T - 1, axis=1)   # comp[(q+1) % T]
                dw_acc += jnp.sum(jnp.where(w_ok, jnp.abs(comp - nb_w), 0.0))
                nb_h = pltpu.roll(comp, shift=T - W, axis=1)   # comp[(q+W) % T]
                dh_acc += jnp.sum(jnp.where(h_ok, jnp.abs(comp - nb_h), 0.0))
                if has_carry:
                    # H-direction pairs straddling the HW-tile boundary:
                    # previous tile's last image row vs this tile's first row.
                    prev = carry_ref[tvi]
                    cross = jnp.sum(jnp.abs(prev - comp[:, :W]))
                    dh_acc += jnp.where(t > 0, cross, 0.0)
                    carry_ref[tvi] = comp[:, T - W:]
                tvi += 1

        hole_ref[0, 0] += hole_acc * inv_hv
        valid_ref[0, 0] += valid_acc * inv_hv
        if n_tv:
            tv_ref[0, 0] += dw_acc * inv_tw + dh_acc * inv_th

    return kernel


def _image_losses(mask, gt, inp, outs, tv_flags, block_lanes):
    B, C, H, W = gt.shape
    HW = H * W
    mC = mask.shape[1]
    m3 = mask.reshape(B, mC, HW)
    g3 = gt.reshape(B, C, HW)
    x3 = inp.reshape(B, C, HW)
    o3 = [o.reshape(B, C, HW) for o in outs]

    align = (W * 128) // math.gcd(W, 128)      # HW tiles keep whole image rows
    if block_lanes is None:
        budget = max(1, _BLOCK_BYTES // (C * gt.dtype.itemsize))
        block_lanes = max(align, (budget // align) * align)
    T = _pick_hw_tile(HW, align, block_lanes)
    n_t = HW // T
    n_out = len(outs)
    n_tv = sum(tv_flags)

    kernel = _make_image_kernel(n_out, tuple(tv_flags), B, C, H, W, T)
    idx = lambda b, t: (b, 0, t)
    in_specs = ([pl.BlockSpec((1, mC, T), idx)]
                + [pl.BlockSpec((1, C, T), idx) for _ in range(2 + n_out)])
    scratch = ([pltpu.VMEM((n_tv, C, W), jnp.float32)]
               if (n_tv and n_t > 1) else [])

    hole, valid, tv = pl.pallas_call(
        kernel,
        out_shape=(_SCALAR, _SCALAR, _SCALAR),
        grid=(B, n_t),
        in_specs=in_specs,
        out_specs=(_SMEM_SPEC, _SMEM_SPEC, _SMEM_SPEC),
        scratch_shapes=scratch,
        compiler_params=_compiler_params(),
    )(m3, g3, x3, *o3)
    return hole[0, 0], valid[0, 0], tv[0, 0]


# ----------------------------------------------------------------------------
# Fused prc + style kernel per feature scale (streams over (batch, HW tiles))
# ----------------------------------------------------------------------------
def _make_feature_kernel(K, style_flags, B, C, HW, T):
    n_in = 1 + 2 * K
    inv_prc = 1.0 / float(B * C * HW)
    inv_sty = 1.0 / float(B * C * C)
    gscale = 1.0 / float(C * HW)

    def kernel(*args):
        in_refs = args[:n_in]
        prc_ref, sty_ref = args[n_in], args[n_in + 1]
        gaccs = args[n_in + 2:]
        fgt_ref = in_refs[0]

        b = pl.program_id(0)
        t = pl.program_id(1)

        @pl.when(jnp.logical_and(b == 0, t == 0))
        def _():
            prc_ref[0, 0] = 0.0
            sty_ref[0, 0] = 0.0

        @pl.when(t == 0)            # new batch element: reset (C,C) gram accumulators
        def _():
            for g in gaccs:
                g[...] = jnp.zeros_like(g)

        # Native-dtype MXU feed (bf16 stays bf16 on v6e/v7x), f32 accumulation.
        fgt = fgt_ref[0]                                      # (C, T)
        fgt32 = fgt.astype(jnp.float32)
        gaccs[0][...] += lax.dot_general(fgt, fgt, _NT,
                                         preferred_element_type=jnp.float32)

        prc_part = 0.0
        gi = 1
        for k in range(K):
            fo = in_refs[1 + 2 * k][0]
            foc = in_refs[2 + 2 * k][0]
            prc_part += jnp.sum(jnp.abs(fo.astype(jnp.float32) - fgt32))
            prc_part += jnp.sum(jnp.abs(foc.astype(jnp.float32) - fgt32))
            if style_flags[k]:
                gaccs[gi][...] += lax.dot_general(
                    fo, fo, _NT, preferred_element_type=jnp.float32)
                gaccs[gi + 1][...] += lax.dot_general(
                    foc, foc, _NT, preferred_element_type=jnp.float32)
                gi += 2
        prc_ref[0, 0] += prc_part * inv_prc

        @pl.when(t == pl.num_programs(1) - 1)   # finalize this batch element's grams
        def _():
            ggt = gaccs[0][...] * gscale
            sty = 0.0
            gj = 1
            for k in range(K):
                if style_flags[k]:
                    go = gaccs[gj][...] * gscale
                    gc = gaccs[gj + 1][...] * gscale
                    sty = sty + jnp.sum(jnp.abs(go - ggt)) + jnp.sum(jnp.abs(gc - ggt))
                    gj += 2
            sty_ref[0, 0] += sty * inv_sty

    return kernel


def _feature_losses(fgt, fo_list, foc_list, style_flags, block_lanes):
    B, C, H, W = fgt.shape
    HW = H * W
    K = len(fo_list)
    n_style = sum(style_flags)
    if block_lanes is None:
        budget = max(128, _BLOCK_BYTES // (C * fgt.dtype.itemsize))
        block_lanes = max(128, (budget // 128) * 128)
    T = _pick_hw_tile(HW, 128, block_lanes)
    n_t = HW // T

    kernel = _make_feature_kernel(K, tuple(style_flags), B, C, HW, T)
    spec = pl.BlockSpec((1, C, T), lambda b, t: (b, 0, t))
    args = [fgt.reshape(B, C, HW)]
    for fo, foc in zip(fo_list, foc_list):
        args.append(fo.reshape(B, C, HW))
        args.append(foc.reshape(B, C, HW))

    prc, sty = pl.pallas_call(
        kernel,
        out_shape=(_SCALAR, _SCALAR),
        grid=(B, n_t),
        in_specs=[spec] * len(args),
        out_specs=(_SMEM_SPEC, _SMEM_SPEC),
        scratch_shapes=[pltpu.VMEM((C, C), jnp.float32)
                        for _ in range(1 + 2 * n_style)],
        compiler_params=_compiler_params(),
    )(*args)
    return prc[0, 0], sty[0, 0]


# ----------------------------------------------------------------------------
# InpaintingLoss.forward (same control flow / semantics as the PyTorch module)
# ----------------------------------------------------------------------------
def _inpainting_loss_impl(inp, mask, outputs, gt, comp_feats, feats, feat_gt,
                          use_incremental_supervision=True,
                          image_block_lanes=None, feat_block_lanes=None):
    n = len(outputs)
    if use_incremental_supervision:
        start_h = 0
        start_p = 0 if n == 1 else 1
        start_s = 0 if n == 1 else (1 if n == 2 else 2)
    else:
        start_h = start_p = start_s = n - 1

    # hole / valid / tv: one fused kernel; mask, gt and input read exactly once.
    outs_used = outputs[start_h:]
    tv_flags = tuple((start_h + i) >= start_s for i in range(len(outs_used)))
    hole, valid, tv = _image_losses(mask, gt, inp, outs_used, tv_flags,
                                    image_block_lanes)

    # prc / style: one fused kernel per feature scale (features read once each).
    K = n - start_p                       # feats indices used by the prc loop
    n_style_k = n - start_s               # prefix of those also used by style
    style_flags = tuple(k < n_style_k for k in range(K))
    prc = 0.0
    style = 0.0
    for j in range(3):
        fo_list = [feats[k][j] for k in range(K)]
        foc_list = [comp_feats[k][j] for k in range(K)]
        p_j, s_j = _feature_losses(feat_gt[j], fo_list, foc_list, style_flags,
                                   feat_block_lanes)
        prc = prc + p_j
        style = style + s_j

    return {'hole': hole, 'valid': valid, 'prc': prc, 'style': style, 'tv': tv}


inpainting_loss = jax.jit(
    _inpainting_loss_impl,
    static_argnames=("use_incremental_supervision",
                     "image_block_lanes", "feat_block_lanes"))


# ----------------------------------------------------------------------------
# Pure-JAX reference (mirrors the PyTorch code) for a numerical check
# ----------------------------------------------------------------------------
def _ref_gram(feat):
    b, c, h, w = feat.shape
    f = feat.reshape(b, c, h * w)
    return jnp.einsum('bij,bkj->bik', f, f) / (c * h * w)


def _ref_tv(img):
    return (jnp.mean(jnp.abs(img[:, :, :, :-1] - img[:, :, :, 1:]))
            + jnp.mean(jnp.abs(img[:, :, :-1, :] - img[:, :, 1:, :])))


def _ref_loss(inp, mask, outputs, gt, comp_feats, feats, feat_gt, use_inc=True):
    loss = {'hole': 0.0, 'valid': 0.0, 'prc': 0.0, 'style': 0.0, 'tv': 0.0}
    n = len(outputs)
    start = 0 if use_inc else n - 1
    for i in range(start, n):
        o = outputs[i]
        loss['hole'] += jnp.mean(jnp.abs((1 - mask) * o - (1 - mask) * gt))
        loss['valid'] += jnp.mean(jnp.abs(mask * o - mask * gt))
    start = (0 if n == 1 else 1) if use_inc else n - 1
    for i in range(start, n):
        fo, foc = feats[i - start], comp_feats[i - start]
        for j in range(3):
            loss['prc'] += jnp.mean(jnp.abs(fo[j] - feat_gt[j]))
            loss['prc'] += jnp.mean(jnp.abs(foc[j] - feat_gt[j]))
    start = (0 if n == 1 else (1 if n == 2 else 2)) if use_inc else n - 1
    for i in range(start, n):
        comp = mask * inp + (1 - mask) * outputs[i]
        fo, foc = feats[i - start], comp_feats[i - start]
        for j in range(3):
            loss['style'] += jnp.mean(jnp.abs(_ref_gram(fo[j]) - _ref_gram(feat_gt[j])))
            loss['style'] += jnp.mean(jnp.abs(_ref_gram(foc[j]) - _ref_gram(feat_gt[j])))
        loss['tv'] += _ref_tv(comp)
    return loss


# ----------------------------------------------------------------------------
if __name__ == "__main__":
    key = jax.random.PRNGKey(0)
    ks = jax.random.split(key, 16)

    B, C, H, W = 2, 3, 16, 16
    inp = jax.random.normal(ks[0], (B, C, H, W), jnp.float32)
    gt = jax.random.normal(ks[1], (B, C, H, W), jnp.float32)
    # Mask stays (B, 1, H, W); it is broadcast in-kernel, never materialised.
    mask = (jax.random.uniform(ks[2], (B, 1, H, W)) > 0.5).astype(jnp.float32)

    outputs = [jax.random.normal(ks[3], (B, C, H, W), jnp.float32),
               jax.random.normal(ks[4], (B, C, H, W), jnp.float32)]

    # three "VGG" feature scales
    feat_shapes = [(B, 8, 16, 16), (B, 16, 8, 8), (B, 32, 4, 4)]
    feat_gt = [jax.random.normal(ks[5 + j], s, jnp.float32)
               for j, s in enumerate(feat_shapes)]
    feats = [[jax.random.normal(ks[8 + j], s, jnp.float32)
              for j, s in enumerate(feat_shapes)]]
    comp_feats = [[jax.random.normal(ks[11 + j], s, jnp.float32)
                   for j, s in enumerate(feat_shapes)]]

    ref = _ref_loss(inp, mask, outputs, gt, comp_feats, feats, feat_gt, True)

    def _check(loss, tag):
        for k in loss:
            got, want = float(loss[k]), float(ref[k])
            assert abs(got - want) <= 1e-3 * max(1.0, abs(want)), (tag, k, got, want)

    # 1) default (auto) tiling
    loss = inpainting_loss(inp, mask, outputs, gt, comp_feats, feats, feat_gt,
                           use_incremental_supervision=True)
    loss = {k: jax.block_until_ready(v) for k, v in loss.items()}
    _check(loss, "auto")

    # 2) forced small tiles: exercises the multi-tile paths (TV boundary carry,
    #    tiled gram accumulation across HW tiles).
    loss2 = inpainting_loss(inp, mask, outputs, gt, comp_feats, feats, feat_gt,
                            use_incremental_supervision=True,
                            image_block_lanes=128, feat_block_lanes=128)
    loss2 = {k: jax.block_until_ready(v) for k, v in loss2.items()}
    _check(loss2, "tiled")

    print("KERNEL_OK")
</pallas_src>

<mosaic_0001>
module attributes {stable_mosaic.version = 11 : i64} {
  func.func @kernel(%arg0: i32, %arg1: i32, %arg2: memref<1x8x256xf32, #tpu.memory_space<vmem>>, %arg3: memref<1x8x256xf32, #tpu.memory_space<vmem>>, %arg4: memref<1x8x256xf32, #tpu.memory_space<vmem>>, %arg5: memref<1x1xf32, #tpu.memory_space<smem>>, %arg6: memref<1x1xf32, #tpu.memory_space<smem>>, %arg7: memref<8x8xf32, #tpu.memory_space<vmem>>, %arg8: memref<8x8xf32, #tpu.memory_space<vmem>>, %arg9: memref<8x8xf32, #tpu.memory_space<vmem>>) attributes {dimension_semantics = [#tpu.dimension_semantics<arbitrary>, #tpu.dimension_semantics<arbitrary>], iteration_bounds = array<i64: 2, 1>, scalar_prefetch = 0 : i64, scratch_operands = 3 : i64, tpu.core_type = #tpu.core_type<tc>, window_params = [{transform_indices = @transform_0, window_bounds = array<i64: 1, 8, 256>}, {transform_indices = @transform_1, window_bounds = array<i64: 1, 8, 256>}, {transform_indices = @transform_2, window_bounds = array<i64: 1, 8, 256>}, {transform_indices = @transform_3, window_bounds = array<i64: 1, 1>}, {transform_indices = @transform_4, window_bounds = array<i64: 1, 1>}]} {
    %c0_i32 = arith.constant 0 : i32
    %0 = arith.cmpi eq, %arg0, %c0_i32 : i32
    %c0_i32_0 = arith.constant 0 : i32
    %1 = arith.cmpi eq, %arg1, %c0_i32_0 : i32
    %2 = arith.andi %0, %1 : i1
    %3 = arith.extui %2 : i1 to i32
    %c0_i32_1 = arith.constant 0 : i32
    %4 = arith.cmpi ne, %3, %c0_i32_1 : i32
    scf.if %4 {
      %cst_36 = arith.constant 0.000000e+00 : f32
      %c0_37 = arith.constant 0 : index
      %c0_38 = arith.constant 0 : index
      %47 = memref.load %arg5[%c0_37, %c0_38] : memref<1x1xf32, #tpu.memory_space<smem>>
      memref.store %cst_36, %arg5[%c0_37, %c0_38] : memref<1x1xf32, #tpu.memory_space<smem>>
      %cst_39 = arith.constant 0.000000e+00 : f32
      %c0_40 = arith.constant 0 : index
      %c0_41 = arith.constant 0 : index
      %48 = memref.load %arg6[%c0_40, %c0_41] : memref<1x1xf32, #tpu.memory_space<smem>>
      memref.store %cst_39, %arg6[%c0_40, %c0_41] : memref<1x1xf32, #tpu.memory_space<smem>>
    } else {
    }
    %c0_i32_2 = arith.constant 0 : i32
    %5 = arith.cmpi eq, %arg1, %c0_i32_2 : i32
    %6 = arith.extui %5 : i1 to i32
    %c0_i32_3 = arith.constant 0 : i32
    %7 = arith.cmpi ne, %6, %c0_i32_3 : i32
    scf.if %7 {
      %cst_36 = arith.constant 0.000000e+00 : f32
      %47 = vector.broadcast %cst_36 : f32 to vector<8x8xf32>
      %c0_37 = arith.constant 0 : index
      %c0_38 = arith.constant 0 : index
      %48 = vector.load %arg7[%c0_37, %c0_38] : memref<8x8xf32, #tpu.memory_space<vmem>>, vector<8x8xf32>
      tpu.vector_store %arg7[%c0_37, %c0_38], %47 {strides = array<i32>} : memref<8x8xf32, #tpu.memory_space<vmem>>, vector<8x8xf32>,
      %cst_39 = arith.constant 0.000000e+00 : f32
      %49 = vector.broadcast %cst_39 : f32 to vector<8x8xf32>
      %c0_40 = arith.constant 0 : index
      %c0_41 = arith.constant 0 : index
      %50 = vector.load %arg8[%c0_40, %c0_41] : memref<8x8xf32, #tpu.memory_space<vmem>>, vector<8x8xf32>
      tpu.vector_store %arg8[%c0_40, %c0_41], %49 {strides = array<i32>} : memref<8x8xf32, #tpu.memory_space<vmem>>, vector<8x8xf32>,
      %cst_42 = arith.constant 0.000000e+00 : f32
      %51 = vector.broadcast %cst_42 : f32 to vector<8x8xf32>
      %c0_43 = arith.constant 0 : index
      %c0_44 = arith.constant 0 : index
      %52 = vector.load %arg9[%c0_43, %c0_44] : memref<8x8xf32, #tpu.memory_space<vmem>>, vector<8x8xf32>
      tpu.vector_store %arg9[%c0_43, %c0_44], %51 {strides = array<i32>} : memref<8x8xf32, #tpu.memory_space<vmem>>, vector<8x8xf32>,
    } else {
    }
    %c0 = arith.constant 0 : index
    %c0_4 = arith.constant 0 : index
    %c0_5 = arith.constant 0 : index
    %8 = vector.load %arg2[%c0, %c0_4, %c0_5] : memref<1x8x256xf32, #tpu.memory_space<vmem>>, vector<1x8x256xf32>
    %9 = vector.shape_cast %8 : vector<1x8x256xf32> to vector<8x256xf32>
    %c0_6 = arith.constant 0 : index
    %c0_7 = arith.constant 0 : index
    %10 = vector.load %arg7[%c0_6, %c0_7] : memref<8x8xf32, #tpu.memory_space<vmem>>, vector<8x8xf32>
    %cst = arith.constant dense<0.000000e+00> : vector<8x8xf32>
    %11 = tpu.matmul %9, %9, %cst {dimension_numbers = #tpu.dot_dimension_numbers<[1], [1], [0], [0], [0, 0, 1, 0], [], []>} : vector<8x256xf32>, vector<8x256xf32>, vector<8x8xf32> -> vector<8x8xf32>
    %12 = arith.addf %10, %11 : vector<8x8xf32>
    %c0_8 = arith.constant 0 : index
    %c0_9 = arith.constant 0 : index
    %13 = vector.load %arg7[%c0_8, %c0_9] : memref<8x8xf32, #tpu.memory_space<vmem>>, vector<8x8xf32>
    tpu.vector_store %arg7[%c0_8, %c0_9], %12 {strides = array<i32>} : memref<8x8xf32, #tpu.memory_space<vmem>>, vector<8x8xf32>,
    %c0_10 = arith.constant 0 : index
    %c0_11 = arith.constant 0 : index
    %c0_12 = arith.constant 0 : index
    %14 = vector.load %arg3[%c0_10, %c0_11, %c0_12] : memref<1x8x256xf32, #tpu.memory_space<vmem>>, vector<1x8x256xf32>
    %15 = vector.shape_cast %14 : vector<1x8x256xf32> to vector<8x256xf32>
    %c0_13 = arith.constant 0 : index
    %c0_14 = arith.constant 0 : index
    %c0_15 = arith.constant 0 : index
    %16 = vector.load %arg4[%c0_13, %c0_14, %c0_15] : memref<1x8x256xf32, #tpu.memory_space<vmem>>, vector<1x8x256xf32>
    %17 = vector.shape_cast %16 : vector<1x8x256xf32> to vector<8x256xf32>
    %18 = arith.subf %15, %9 : vector<8x256xf32>
    %19 = math.absf %18 : vector<8x256xf32>
    %20 = vector.shape_cast %19 : vector<8x256xf32> to vector<1x8x256xf32>
    %cst_16 = arith.constant dense<0.000000e+00> : vector<1xf32>
    %21 = vector.multi_reduction <add>, %20, %cst_16 [1, 2] : vector<1x8x256xf32> to vector<1xf32>
    %22 = vector.shape_cast %21 : vector<1xf32> to vector<1x1x1xf32>
    %23 = vector.extract %22[0, 0, 0] : f32 from vector<1x1x1xf32>
    %cst_17 = arith.constant 0.000000e+00 : f32
    %24 = arith.addf %cst_17, %23 : f32
    %25 = arith.subf %17, %9 : vector<8x256xf32>
    %26 = math.absf %25 : vector<8x256xf32>
    %27 = vector.shape_cast %26 : vector<8x256xf32> to vector<1x8x256xf32>
    %cst_18 = arith.constant dense<0.000000e+00> : vector<1xf32>
    %28 = vector.multi_reduction <add>, %27, %cst_18 [1, 2] : vector<1x8x256xf32> to vector<1xf32>
    %29 = vector.shape_cast %28 : vector<1xf32> to vector<1x1x1xf32>
    %30 = vector.extract %29[0, 0, 0] : f32 from vector<1x1x1xf32>
    %31 = arith.addf %24, %30 : f32
    %c0_19 = arith.constant 0 : index
    %c0_20 = arith.constant 0 : index
    %32 = vector.load %arg8[%c0_19, %c0_20] : memref<8x8xf32, #tpu.memory_space<vmem>>, vector<8x8xf32>
    %cst_21 = arith.constant dense<0.000000e+00> : vector<8x8xf32>
    %33 = tpu.matmul %15, %15, %cst_21 {dimension_numbers = #tpu.dot_dimension_numbers<[1], [1], [0], [0], [0, 0, 1, 0], [], []>} : vector<8x256xf32>, vector<8x256xf32>, vector<8x8xf32> -> vector<8x8xf32>
    %34 = arith.addf %32, %33 : vector<8x8xf32>
    %c0_22 = arith.constant 0 : index
    %c0_23 = arith.constant 0 : index
    %35 = vector.load %arg8[%c0_22, %c0_23] : memref<8x8xf32, #tpu.memory_space<vmem>>, vector<8x8xf32>
    tpu.vector_store %arg8[%c0_22, %c0_23], %34 {strides = array<i32>} : memref<8x8xf32, #tpu.memory_space<vmem>>, vector<8x8xf32>,
    %c0_24 = arith.constant 0 : index
    %c0_25 = arith.constant 0 : index
    %36 = vector.load %arg9[%c0_24, %c0_25] : memref<8x8xf32, #tpu.memory_space<vmem>>, vector<8x8xf32>
    %cst_26 = arith.constant dense<0.000000e+00> : vector<8x8xf32>
    %37 = tpu.matmul %17, %17, %cst_26 {dimension_numbers = #tpu.dot_dimension_numbers<[1], [1], [0], [0], [0, 0, 1, 0], [], []>} : vector<8x256xf32>, vector<8x256xf32>, vector<8x8xf32> -> vector<8x8xf32>
    %38 = arith.addf %36, %37 : vector<8x8xf32>
    %c0_27 = arith.constant 0 : index
    %c0_28 = arith.constant 0 : index
    %39 = vector.load %arg9[%c0_27, %c0_28] : memref<8x8xf32, #tpu.memory_space<vmem>>, vector<8x8xf32>
    tpu.vector_store %arg9[%c0_27, %c0_28], %38 {strides = array<i32>} : memref<8x8xf32, #tpu.memory_space<vmem>>, vector<8x8xf32>,
    %c0_29 = arith.constant 0 : index
    %c0_30 = arith.constant 0 : index
    %40 = memref.load %arg5[%c0_29, %c0_30] : memref<1x1xf32, #tpu.memory_space<smem>>
    %cst_31 = arith.constant 2.44140625E-4 : f32
    %41 = arith.mulf %31, %cst_31 : f32
    %42 = arith.addf %40, %41 : f32
    %c0_32 = arith.constant 0 : index
    %c0_33 = arith.constant 0 : index
    %43 = memref.load %arg5[%c0_32, %c0_33] : memref<1x1xf32, #tpu.memory_space<smem>>
    memref.store %42, %arg5[%c0_32, %c0_33] : memref<1x1xf32, #tpu.memory_space<smem>>
    %c0_i32_34 = arith.constant 0 : i32
    %44 = arith.cmpi eq, %arg1, %c0_i32_34 : i32
    %45 = arith.extui %44 : i1 to i32
    %c0_i32_35 = arith.constant 0 : i32
    %46 = arith.cmpi ne, %45, %c0_i32_35 : i32
    scf.if %46 {
      %c0_36 = arith.constant 0 : index
      %c0_37 = arith.constant 0 : index
      %47 = vector.load %arg7[%c0_36, %c0_37] : memref<8x8xf32, #tpu.memory_space<vmem>>, vector<8x8xf32>
      %cst_38 = arith.constant 4.8828125E-4 : f32
      %48 = vector.broadcast %cst_38 : f32 to vector<8x8xf32>
      %49 = arith.mulf %47, %48 : vector<8x8xf32>
      %c0_39 = arith.constant 0 : index
      %c0_40 = arith.constant 0 : index
      %50 = vector.load %arg8[%c0_39, %c0_40] : memref<8x8xf32, #tpu.memory_space<vmem>>, vector<8x8xf32>
      %cst_41 = arith.constant 4.8828125E-4 : f32
      %51 = vector.broadcast %cst_41 : f32 to vector<8x8xf32>
      %52 = arith.mulf %50, %51 : vector<8x8xf32>
      %c0_42 = arith.constant 0 : index
      %c0_43 = arith.constant 0 : index
      %53 = vector.load %arg9[%c0_42, %c0_43] : memref<8x8xf32, #tpu.memory_space<vmem>>, vector<8x8xf32>
      %cst_44 = arith.constant 4.8828125E-4 : f32
      %54 = vector.broadcast %cst_44 : f32 to vector<8x8xf32>
      %55 = arith.mulf %53, %54 : vector<8x8xf32>
      %56 = arith.subf %52, %49 : vector<8x8xf32>
      %57 = math.absf %56 : vector<8x8xf32>
      %58 = vector.shape_cast %57 : vector<8x8xf32> to vector<1x8x8xf32>
      %cst_45 = arith.constant dense<0.000000e+00> : vector<1xf32>
      %59 = vector.multi_reduction <add>, %58, %cst_45 [1, 2] : vector<1x8x8xf32> to vector<1xf32>
      %60 = vector.shape_cast %59 : vector<1xf32> to vector<1x1x1xf32>
      %61 = vector.extract %60[0, 0, 0] : f32 from vector<1x1x1xf32>
      %cst_46 = arith.constant 0.000000e+00 : f32
      %62 = arith.addf %cst_46, %61 : f32
      %63 = arith.subf %55, %49 : vector<8x8xf32>
      %64 = math.absf %63 : vector<8x8xf32>
      %65 = vector.shape_cast %64 : vector<8x8xf32> to vector<1x8x8xf32>
      %cst_47 = arith.constant dense<0.000000e+00> : vector<1xf32>
      %66 = vector.multi_reduction <add>, %65, %cst_47 [1, 2] : vector<1x8x8xf32> to vector<1xf32>
      %67 = vector.shape_cast %66 : vector<1xf32> to vector<1x1x1xf32>
      %68 = vector.extract %67[0, 0, 0] : f32 from vector<1x1x1xf32>
      %69 = arith.addf %62, %68 : f32
      %c0_48 = arith.constant 0 : index
      %c0_49 = arith.constant 0 : index
      %70 = memref.load %arg6[%c0_48, %c0_49] : memref<1x1xf32, #tpu.memory_space<smem>>
      %cst_50 = arith.constant 7.812500e-03 : f32
      %71 = arith.mulf %69, %cst_50 : f32
      %72 = arith.addf %70, %71 : f32
      %c0_51 = arith.constant 0 : index
      %c0_52 = arith.constant 0 : index
      %73 = memref.load %arg6[%c0_51, %c0_52] : memref<1x1xf32, #tpu.memory_space<smem>>
      memref.store %72, %arg6[%c0_51, %c0_52] : memref<1x1xf32, #tpu.memory_space<smem>>
    } else {
    }
    return
  }
  func.func @transform_0(%arg0: i32, %arg1: i32) -> (i32, i32, i32) {
    %c0_i32 = arith.constant 0 : i32
    %c0_i32_0 = arith.constant 0 : i32
    return %arg0, %c0_i32, %arg1 : i32, i32, i32
  }
  func.func @transform_1(%arg0: i32, %arg1: i32) -> (i32, i32, i32) {
    %c0_i32 = arith.constant 0 : i32
    %c0_i32_0 = arith.constant 0 : i32
    return %arg0, %c0_i32, %arg1 : i32, i32, i32
  }
  func.func @transform_2(%arg0: i32, %arg1: i32) -> (i32, i32, i32) {
    %c0_i32 = arith.constant 0 : i32
    %c0_i32_0 = arith.constant 0 : i32
    return %arg0, %c0_i32, %arg1 : i32, i32, i32
  }
  func.func @transform_3(%arg0: i32, %arg1: i32) -> (i32, i32) {
    %c0_i32 = arith.constant 0 : i32
    %c0_i32_0 = arith.constant 0 : i32
    %c0_i32_1 = arith.constant 0 : i32
    return %c0_i32, %c0_i32_0 : i32, i32
  }
  func.func @transform_4(%arg0: i32, %arg1: i32) -> (i32, i32) {
    %c0_i32 = arith.constant 0 : i32
    %c0_i32_0 = arith.constant 0 : i32
    %c0_i32_1 = arith.constant 0 : i32
    return %c0_i32, %c0_i32_0 : i32, i32
  }
}

module attributes {stable_mosaic.version = 11 : i64} {
  func.func @kernel(%arg0: i32, %arg1: i32, %arg2: memref<1x1x256xf32, #tpu.memory_space<vmem>>, %arg3: memref<1x3x256xf32, #tpu.memory_space<vmem>>, %arg4: memref<1x3x256xf32, #tpu.memory_space<vmem>>, %arg5: memref<1x3x256xf32, #tpu.memory_space<vmem>>, %arg6: memref<1x3x256xf32, #tpu.memory_space<vmem>>, %arg7: memref<1x1xf32, #tpu.memory_space<smem>>, %arg8: memref<1x1xf32, #tpu.memory_space<smem>>, %arg9: memref<1x1xf32, #tpu.memory_space<smem>>) attributes {dimension_semantics = [#tpu.dimension_semantics<arbitrary>, #tpu.dimension_semantics<arbitrary>], iteration_bounds = array<i64: 2, 1>, scalar_prefetch = 0 : i64, scratch_operands = 0 : i64, tpu.core_type = #tpu.core_type<tc>, window_params = [{transform_indices = @transform_0, window_bounds = array<i64: 1, 1, 256>}, {transform_indices = @transform_1, window_bounds = array<i64: 1, 3, 256>}, {transform_indices = @transform_2, window_bounds = array<i64: 1, 3, 256>}, {transform_indices = @transform_3, window_bounds = array<i64: 1, 3, 256>}, {transform_indices = @transform_4, window_bounds = array<i64: 1, 3, 256>}, {transform_indices = @transform_5, window_bounds = array<i64: 1, 1>}, {transform_indices = @transform_6, window_bounds = array<i64: 1, 1>}, {transform_indices = @transform_7, window_bounds = array<i64: 1, 1>}]} {
    %c0_i32 = arith.constant 0 : i32
    %0 = arith.cmpi eq, %arg0, %c0_i32 : i32
    %c0_i32_0 = arith.constant 0 : i32
    %1 = arith.cmpi eq, %arg1, %c0_i32_0 : i32
    %2 = arith.andi %0, %1 : i1
    %3 = arith.extui %2 : i1 to i32
    %c0_i32_1 = arith.constant 0 : i32
    %4 = arith.cmpi ne, %3, %c0_i32_1 : i32
    scf.if %4 {
      %cst_46 = arith.constant 0.000000e+00 : f32
      %c0_47 = arith.constant 0 : index
      %c0_48 = arith.constant 0 : index
      %97 = memref.load %arg7[%c0_47, %c0_48] : memref<1x1xf32, #tpu.memory_space<smem>>
      memref.store %cst_46, %arg7[%c0_47, %c0_48] : memref<1x1xf32, #tpu.memory_space<smem>>
      %cst_49 = arith.constant 0.000000e+00 : f32
      %c0_50 = arith.constant 0 : index
      %c0_51 = arith.constant 0 : index
      %98 = memref.load %arg8[%c0_50, %c0_51] : memref<1x1xf32, #tpu.memory_space<smem>>
      memref.store %cst_49, %arg8[%c0_50, %c0_51] : memref<1x1xf32, #tpu.memory_space<smem>>
      %cst_52 = arith.constant 0.000000e+00 : f32
      %c0_53 = arith.constant 0 : index
      %c0_54 = arith.constant 0 : index
      %99 = memref.load %arg9[%c0_53, %c0_54] : memref<1x1xf32, #tpu.memory_space<smem>>
      memref.store %cst_52, %arg9[%c0_53, %c0_54] : memref<1x1xf32, #tpu.memory_space<smem>>
    } else {
    }
    %c0 = arith.constant 0 : index
    %c0_2 = arith.constant 0 : index
    %c0_3 = arith.constant 0 : index
    %5 = vector.load %arg2[%c0, %c0_2, %c0_3] : memref<1x1x256xf32, #tpu.memory_space<vmem>>, vector<1x1x256xf32>
    %6 = vector.shape_cast %5 : vector<1x1x256xf32> to vector<1x256xf32>
    %c0_4 = arith.constant 0 : index
    %c0_5 = arith.constant 0 : index
    %c0_6 = arith.constant 0 : index
    %7 = vector.load %arg3[%c0_4, %c0_5, %c0_6] : memref<1x3x256xf32, #tpu.memory_space<vmem>>, vector<1x3x256xf32>
    %8 = vector.shape_cast %7 : vector<1x3x256xf32> to vector<3x256xf32>
    %c0_7 = arith.constant 0 : index
    %c0_8 = arith.constant 0 : index
    %c0_9 = arith.constant 0 : index
    %9 = vector.load %arg4[%c0_7, %c0_8, %c0_9] : memref<1x3x256xf32, #tpu.memory_space<vmem>>, vector<1x3x256xf32>
    %10 = vector.shape_cast %9 : vector<1x3x256xf32> to vector<3x256xf32>
    %cst = arith.constant 1.000000e+00 : f32
    %11 = vector.broadcast %cst : f32 to vector<1x256xf32>
    %12 = arith.subf %11, %6 : vector<1x256xf32>
    %13 = tpu.iota {dimensions = array<i32: 1>} : vector<3x256xi32>
    %c15_i32 = arith.constant 15 : i32
    %14 = vector.broadcast %c15_i32 : i32 to vector<3x256xi32>
    %15 = arith.andi %13, %14 : vector<3x256xi32>
    %c15_i32_10 = arith.constant 15 : i32
    %16 = vector.broadcast %c15_i32_10 : i32 to vector<3x256xi32>
    %17 = arith.cmpi ne, %15, %16 : vector<3x256xi32>
    %c240_i32 = arith.constant 240 : i32
    %18 = vector.broadcast %c240_i32 : i32 to vector<3x256xi32>
    %19 = arith.cmpi slt, %13, %18 : vector<3x256xi32>
    %c0_11 = arith.constant 0 : index
    %c0_12 = arith.constant 0 : index
    %c0_13 = arith.constant 0 : index
    %20 = vector.load %arg5[%c0_11, %c0_12, %c0_13] : memref<1x3x256xf32, #tpu.memory_space<vmem>>, vector<1x3x256xf32>
    %21 = vector.shape_cast %20 : vector<1x3x256xf32> to vector<3x256xf32>
    %22 = arith.subf %21, %8 : vector<3x256xf32>
    %23 = vector.broadcast %12 : vector<1x256xf32> to vector<3x256xf32>
    %24 = arith.mulf %23, %22 : vector<3x256xf32>
    %25 = math.absf %24 : vector<3x256xf32>
    %26 = vector.shape_cast %25 : vector<3x256xf32> to vector<1x3x256xf32>
    %cst_14 = arith.constant dense<0.000000e+00> : vector<1xf32>
    %27 = vector.multi_reduction <add>, %26, %cst_14 [1, 2] : vector<1x3x256xf32> to vector<1xf32>
    %28 = vector.shape_cast %27 : vector<1xf32> to vector<1x1x1xf32>
    %29 = vector.extract %28[0, 0, 0] : f32 from vector<1x1x1xf32>
    %cst_15 = arith.constant 0.000000e+00 : f32
    %30 = arith.addf %cst_15, %29 : f32
    %31 = vector.broadcast %6 : vector<1x256xf32> to vector<3x256xf32>
    %32 = arith.mulf %31, %22 : vector<3x256xf32>
    %33 = math.absf %32 : vector<3x256xf32>
    %34 = vector.shape_cast %33 : vector<3x256xf32> to vector<1x3x256xf32>
    %cst_16 = arith.constant dense<0.000000e+00> : vector<1xf32>
    %35 = vector.multi_reduction <add>, %34, %cst_16 [1, 2] : vector<1x3x256xf32> to vector<1xf32>
    %36 = vector.shape_cast %35 : vector<1xf32> to vector<1x1x1xf32>
    %37 = vector.extract %36[0, 0, 0] : f32 from vector<1x1x1xf32>
    %cst_17 = arith.constant 0.000000e+00 : f32
    %38 = arith.addf %cst_17, %37 : f32
    %c0_18 = arith.constant 0 : index
    %c0_19 = arith.constant 0 : index
    %c0_20 = arith.constant 0 : index
    %39 = vector.load %arg6[%c0_18, %c0_19, %c0_20] : memref<1x3x256xf32, #tpu.memory_space<vmem>>, vector<1x3x256xf32>
    %40 = vector.shape_cast %39 : vector<1x3x256xf32> to vector<3x256xf32>
    %41 = arith.subf %40, %8 : vector<3x256xf32>
    %42 = vector.broadcast %12 : vector<1x256xf32> to vector<3x256xf32>
    %43 = arith.mulf %42, %41 : vector<3x256xf32>
    %44 = math.absf %43 : vector<3x256xf32>
    %45 = vector.shape_cast %44 : vector<3x256xf32> to vector<1x3x256xf32>
    %cst_21 = arith.constant dense<0.000000e+00> : vector<1xf32>
    %46 = vector.multi_reduction <add>, %45, %cst_21 [1, 2] : vector<1x3x256xf32> to vector<1xf32>
    %47 = vector.shape_cast %46 : vector<1xf32> to vector<1x1x1xf32>
    %48 = vector.extract %47[0, 0, 0] : f32 from vector<1x1x1xf32>
    %49 = arith.addf %30, %48 : f32
    %50 = vector.broadcast %6 : vector<1x256xf32> to vector<3x256xf32>
    %51 = arith.mulf %50, %41 : vector<3x256xf32>
    %52 = math.absf %51 : vector<3x256xf32>
    %53 = vector.shape_cast %52 : vector<3x256xf32> to vector<1x3x256xf32>
    %cst_22 = arith.constant dense<0.000000e+00> : vector<1xf32>
    %54 = vector.multi_reduction <add>, %53, %cst_22 [1, 2] : vector<1x3x256xf32> to vector<1xf32>
    %55 = vector.shape_cast %54 : vector<1xf32> to vector<1x1x1xf32>
    %56 = vector.extract %55[0, 0, 0] : f32 from vector<1x1x1xf32>
    %57 = arith.addf %38, %56 : f32
    %58 = vector.broadcast %6 : vector<1x256xf32> to vector<3x256xf32>
    %59 = arith.mulf %58, %10 : vector<3x256xf32>
    %60 = vector.broadcast %12 : vector<1x256xf32> to vector<3x256xf32>
    %61 = arith.mulf %60, %40 : vector<3x256xf32>
    %62 = arith.addf %59, %61 : vector<3x256xf32>
    %c255_i32 = arith.constant 255 : i32
    %63 = tpu.dynamic_rotate %62 by %c255_i32 dim 1 : vector<3x256xf32>, i32 -> vector<3x256xf32>
    %64 = arith.subf %62, %63 : vector<3x256xf32>
    %65 = math.absf %64 : vector<3x256xf32>
    %cst_23 = arith.constant 0.000000e+00 : f32
    %66 = vector.broadcast %cst_23 : f32 to vector<3x256xf32>
    %67 = arith.select %17, %65, %66 : vector<3x256xi1>, vector<3x256xf32>
    %68 = vector.shape_cast %67 : vector<3x256xf32> to vector<1x3x256xf32>
    %cst_24 = arith.constant dense<0.000000e+00> : vector<1xf32>
    %69 = vector.multi_reduction <add>, %68, %cst_24 [1, 2] : vector<1x3x256xf32> to vector<1xf32>
    %70 = vector.shape_cast %69 : vector<1xf32> to vector<1x1x1xf32>
    %71 = vector.extract %70[0, 0, 0] : f32 from vector<1x1x1xf32>
    %cst_25 = arith.constant 0.000000e+00 : f32
    %72 = arith.addf %cst_25, %71 : f32
    %c240_i32_26 = arith.constant 240 : i32
    %73 = tpu.dynamic_rotate %62 by %c240_i32_26 dim 1 : vector<3x256xf32>, i32 -> vector<3x256xf32>
    %74 = arith.subf %62, %73 : vector<3x256xf32>
    %75 = math.absf %74 : vector<3x256xf32>
    %cst_27 = arith.constant 0.000000e+00 : f32
    %76 = vector.broadcast %cst_27 : f32 to vector<3x256xf32>
    %77 = arith.select %19, %75, %76 : vector<3x256xi1>, vector<3x256xf32>
    %78 = vector.shape_cast %77 : vector<3x256xf32> to vector<1x3x256xf32>
    %cst_28 = arith.constant dense<0.000000e+00> : vector<1xf32>
    %79 = vector.multi_reduction <add>, %78, %cst_28 [1, 2] : vector<1x3x256xf32> to vector<1xf32>
    %80 = vector.shape_cast %79 : vector<1xf32> to vector<1x1x1xf32>
    %81 = vector.extract %80[0, 0, 0] : f32 from vector<1x1x1xf32>
    %cst_29 = arith.constant 0.000000e+00 : f32
    %82 = arith.addf %cst_29, %81 : f32
    %c0_30 = arith.constant 0 : index
    %c0_31 = arith.constant 0 : index
    %83 = memref.load %arg7[%c0_30, %c0_31] : memref<1x1xf32, #tpu.memory_space<smem>>
    %cst_32 = arith.constant 6.51041686E-4 : f32
    %84 = arith.mulf %49, %cst_32 : f32
    %85 = arith.addf %83, %84 : f32
    %c0_33 = arith.constant 0 : index
    %c0_34 = arith.constant 0 : index
    %86 = memref.load %arg7[%c0_33, %c0_34] : memref<1x1xf32, #tpu.memory_space<smem>>
    memref.store %85, %arg7[%c0_33, %c0_34] : memref<1x1xf32, #tpu.memory_space<smem>>
    %c0_35 = arith.constant 0 : index
    %c0_36 = arith.constant 0 : index
    %87 = memref.load %arg8[%c0_35, %c0_36] : memref<1x1xf32, #tpu.memory_space<smem>>
    %cst_37 = arith.constant 6.51041686E-4 : f32
    %88 = arith.mulf %57, %cst_37 : f32
    %89 = arith.addf %87, %88 : f32
    %c0_38 = arith.constant 0 : index
    %c0_39 = arith.constant 0 : index
    %90 = memref.load %arg8[%c0_38, %c0_39] : memref<1x1xf32, #tpu.memory_space<smem>>
    memref.store %89, %arg8[%c0_38, %c0_39] : memref<1x1xf32, #tpu.memory_space<smem>>
    %c0_40 = arith.constant 0 : index
    %c0_41 = arith.constant 0 : index
    %91 = memref.load %arg9[%c0_40, %c0_41] : memref<1x1xf32, #tpu.memory_space<smem>>
    %cst_42 = arith.constant 6.94444461E-4 : f32
    %92 = arith.mulf %72, %cst_42 : f32
    %cst_43 = arith.constant 6.94444461E-4 : f32
    %93 = arith.mulf %82, %cst_43 : f32
    %94 = arith.addf %92, %93 : f32
    %95 = arith.addf %91, %94 : f32
    %c0_44 = arith.constant 0 : index
    %c0_45 = arith.constant 0 : index
    %96 = memref.load %arg9[%c0_44, %c0_45] : memref<1x1xf32, #tpu.memory_space<smem>>
    memref.store %95, %arg9[%c0_44, %c0_45] : memref<1x1xf32, #tpu.memory_space<smem>>
    return
  }
  func.func @transform_0(%arg0: i32, %arg1: i32) -> (i32, i32, i32) {
    %c0_i32 = arith.constant 0 : i32
    %c0_i32_0 = arith.constant 0 : i32
    return %arg0, %c0_i32, %arg1 : i32, i32, i32
  }
  func.func @transform_1(%arg0: i32, %arg1: i32) -> (i32, i32, i32) {
    %c0_i32 = arith.constant 0 : i32
    %c0_i32_0 = arith.constant 0 : i32
    return %arg0, %c0_i32, %arg1 : i32, i32, i32
  }
  func.func @transform_2(%arg0: i32, %arg1: i32) -> (i32, i32, i32) {
    %c0_i32 = arith.constant 0 : i32
    %c0_i32_0 = arith.constant 0 : i32
    return %arg0, %c0_i32, %arg1 : i32, i32, i32
  }
  func.func @transform_3(%arg0: i32, %arg1: i32) -> (i32, i32, i32) {
    %c0_i32 = arith.constant 0 : i32
    %c0_i32_0 = arith.constant 0 : i32
    return %arg0, %c0_i32, %arg1 : i32, i32, i32
  }
  func.func @transform_4(%arg0: i32, %arg1: i32) -> (i32, i32, i32) {
    %c0_i32 = arith.constant 0 : i32
    %c0_i32_0 = arith.constant 0 : i32
    return %arg0, %c0_i32, %arg1 : i32, i32, i32
  }
  func.func @transform_5(%arg0: i32, %arg1: i32) -> (i32, i32) {
    %c0_i32 = arith.constant 0 : i32
    %c0_i32_0 = arith.constant 0 : i32
    %c0_i32_1 = arith.constant 0 : i32
    return %c0_i32, %c0_i32_0 : i32, i32
  }
  func.func @transform_6(%arg0: i32, %arg1: i32) -> (i32, i32) {
    %c0_i32 = arith.constant 0 : i32
    %c0_i32_0 = arith.constant 0 : i32
    %c0_i32_1 = arith.constant 0 : i32
    return %c0_i32, %c0_i32_0 : i32, i32
  }
  func.func @transform_7(%arg0: i32, %arg1: i32) -> (i32, i32) {
    %c0_i32 = arith.constant 0 : i32
    %c0_i32_0 = arith.constant 0 : i32
    %c0_i32_1 = arith.constant 0 : i32
    return %c0_i32, %c0_i32_0 : i32, i32
  }
}

module attributes {stable_mosaic.version = 11 : i64} {
  func.func @kernel(%arg0: i32, %arg1: i32, %arg2: memref<1x32x16xf32, #tpu.memory_space<vmem>>, %arg3: memref<1x32x16xf32, #tpu.memory_space<vmem>>, %arg4: memref<1x32x16xf32, #tpu.memory_space<vmem>>, %arg5: memref<1x1xf32, #tpu.memory_space<smem>>, %arg6: memref<1x1xf32, #tpu.memory_space<smem>>, %arg7: memref<32x32xf32, #tpu.memory_space<vmem>>, %arg8: memref<32x32xf32, #tpu.memory_space<vmem>>, %arg9: memref<32x32xf32, #tpu.memory_space<vmem>>) attributes {dimension_semantics = [#tpu.dimension_semantics<arbitrary>, #tpu.dimension_semantics<arbitrary>], iteration_bounds = array<i64: 2, 1>, scalar_prefetch = 0 : i64, scratch_operands = 3 : i64, tpu.core_type = #tpu.core_type<tc>, window_params = [{transform_indices = @transform_0, window_bounds = array<i64: 1, 32, 16>}, {transform_indices = @transform_1, window_bounds = array<i64: 1, 32, 16>}, {transform_indices = @transform_2, window_bounds = array<i64: 1, 32, 16>}, {transform_indices = @transform_3, window_bounds = array<i64: 1, 1>}, {transform_indices = @transform_4, window_bounds = array<i64: 1, 1>}]} {
    %c0_i32 = arith.constant 0 : i32
    %0 = arith.cmpi eq, %arg0, %c0_i32 : i32
    %c0_i32_0 = arith.constant 0 : i32
    %1 = arith.cmpi eq, %arg1, %c0_i32_0 : i32
    %2 = arith.andi %0, %1 : i1
    %3 = arith.extui %2 : i1 to i32
    %c0_i32_1 = arith.constant 0 : i32
    %4 = arith.cmpi ne, %3, %c0_i32_1 : i32
    scf.if %4 {
      %cst_36 = arith.constant 0.000000e+00 : f32
      %c0_37 = arith.constant 0 : index
      %c0_38 = arith.constant 0 : index
      %47 = memref.load %arg5[%c0_37, %c0_38] : memref<1x1xf32, #tpu.memory_space<smem>>
      memref.store %cst_36, %arg5[%c0_37, %c0_38] : memref<1x1xf32, #tpu.memory_space<smem>>
      %cst_39 = arith.constant 0.000000e+00 : f32
      %c0_40 = arith.constant 0 : index
      %c0_41 = arith.constant 0 : index
      %48 = memref.load %arg6[%c0_40, %c0_41] : memref<1x1xf32, #tpu.memory_space<smem>>
      memref.store %cst_39, %arg6[%c0_40, %c0_41] : memref<1x1xf32, #tpu.memory_space<smem>>
    } else {
    }
    %c0_i32_2 = arith.constant 0 : i32
    %5 = arith.cmpi eq, %arg1, %c0_i32_2 : i32
    %6 = arith.extui %5 : i1 to i32
    %c0_i32_3 = arith.constant 0 : i32
    %7 = arith.cmpi ne, %6, %c0_i32_3 : i32
    scf.if %7 {
      %cst_36 = arith.constant 0.000000e+00 : f32
      %47 = vector.broadcast %cst_36 : f32 to vector<32x32xf32>
      %c0_37 = arith.constant 0 : index
      %c0_38 = arith.constant 0 : index
      %48 = vector.load %arg7[%c0_37, %c0_38] : memref<32x32xf32, #tpu.memory_space<vmem>>, vector<32x32xf32>
      tpu.vector_store %arg7[%c0_37, %c0_38], %47 {strides = array<i32>} : memref<32x32xf32, #tpu.memory_space<vmem>>, vector<32x32xf32>,
      %cst_39 = arith.constant 0.000000e+00 : f32
      %49 = vector.broadcast %cst_39 : f32 to vector<32x32xf32>
      %c0_40 = arith.constant 0 : index
      %c0_41 = arith.constant 0 : index
      %50 = vector.load %arg8[%c0_40, %c0_41] : memref<32x32xf32, #tpu.memory_space<vmem>>, vector<32x32xf32>
      tpu.vector_store %arg8[%c0_40, %c0_41], %49 {strides = array<i32>} : memref<32x32xf32, #tpu.memory_space<vmem>>, vector<32x32xf32>,
      %cst_42 = arith.constant 0.000000e+00 : f32
      %51 = vector.broadcast %cst_42 : f32 to vector<32x32xf32>
      %c0_43 = arith.constant 0 : index
      %c0_44 = arith.constant 0 : index
      %52 = vector.load %arg9[%c0_43, %c0_44] : memref<32x32xf32, #tpu.memory_space<vmem>>, vector<32x32xf32>
      tpu.vector_store %arg9[%c0_43, %c0_44], %51 {strides = array<i32>} : memref<32x32xf32, #tpu.memory_space<vmem>>, vector<32x32xf32>,
    } else {
    }
    %c0 = arith.constant 0 : index
    %c0_4 = arith.constant 0 : index
    %c0_5 = arith.constant 0 : index
    %8 = vector.load %arg2[%c0, %c0_4, %c0_5] : memref<1x32x16xf32, #tpu.memory_space<vmem>>, vector<1x32x16xf32>
    %9 = vector.shape_cast %8 : vector<1x32x16xf32> to vector<32x16xf32>
    %c0_6 = arith.constant 0 : index
    %c0_7 = arith.constant 0 : index
    %10 = vector.load %arg7[%c0_6, %c0_7] : memref<32x32xf32, #tpu.memory_space<vmem>>, vector<32x32xf32>
    %cst = arith.constant dense<0.000000e+00> : vector<32x32xf32>
    %11 = tpu.matmul %9, %9, %cst {dimension_numbers = #tpu.dot_dimension_numbers<[1], [1], [0], [0], [0, 0, 1, 0], [], []>} : vector<32x16xf32>, vector<32x16xf32>, vector<32x32xf32> -> vector<32x32xf32>
    %12 = arith.addf %10, %11 : vector<32x32xf32>
    %c0_8 = arith.constant 0 : index
    %c0_9 = arith.constant 0 : index
    %13 = vector.load %arg7[%c0_8, %c0_9] : memref<32x32xf32, #tpu.memory_space<vmem>>, vector<32x32xf32>
    tpu.vector_store %arg7[%c0_8, %c0_9], %12 {strides = array<i32>} : memref<32x32xf32, #tpu.memory_space<vmem>>, vector<32x32xf32>,
    %c0_10 = arith.constant 0 : index
    %c0_11 = arith.constant 0 : index
    %c0_12 = arith.constant 0 : index
    %14 = vector.load %arg3[%c0_10, %c0_11, %c0_12] : memref<1x32x16xf32, #tpu.memory_space<vmem>>, vector<1x32x16xf32>
    %15 = vector.shape_cast %14 : vector<1x32x16xf32> to vector<32x16xf32>
    %c0_13 = arith.constant 0 : index
    %c0_14 = arith.constant 0 : index
    %c0_15 = arith.constant 0 : index
    %16 = vector.load %arg4[%c0_13, %c0_14, %c0_15] : memref<1x32x16xf32, #tpu.memory_space<vmem>>, vector<1x32x16xf32>
    %17 = vector.shape_cast %16 : vector<1x32x16xf32> to vector<32x16xf32>
    %18 = arith.subf %15, %9 : vector<32x16xf32>
    %19 = math.absf %18 : vector<32x16xf32>
    %20 = vector.shape_cast %19 : vector<32x16xf32> to vector<1x32x16xf32>
    %cst_16 = arith.constant dense<0.000000e+00> : vector<1xf32>
    %21 = vector.multi_reduction <add>, %20, %cst_16 [1, 2] : vector<1x32x16xf32> to vector<1xf32>
    %22 = vector.shape_cast %21 : vector<1xf32> to vector<1x1x1xf32>
    %23 = vector.extract %22[0, 0, 0] : f32 from vector<1x1x1xf32>
    %cst_17 = arith.constant 0.000000e+00 : f32
    %24 = arith.addf %cst_17, %23 : f32
    %25 = arith.subf %17, %9 : vector<32x16xf32>
    %26 = math.absf %25 : vector<32x16xf32>
    %27 = vector.shape_cast %26 : vector<32x16xf32> to vector<1x32x16xf32>
    %cst_18 = arith.constant dense<0.000000e+00> : vector<1xf32>
    %28 = vector.multi_reduction <add>, %27, %cst_18 [1, 2] : vector<1x32x16xf32> to vector<1xf32>
    %29 = vector.shape_cast %28 : vector<1xf32> to vector<1x1x1xf32>
    %30 = vector.extract %29[0, 0, 0] : f32 from vector<1x1x1xf32>
    %31 = arith.addf %24, %30 : f32
    %c0_19 = arith.constant 0 : index
    %c0_20 = arith.constant 0 : index
    %32 = vector.load %arg8[%c0_19, %c0_20] : memref<32x32xf32, #tpu.memory_space<vmem>>, vector<32x32xf32>
    %cst_21 = arith.constant dense<0.000000e+00> : vector<32x32xf32>
    %33 = tpu.matmul %15, %15, %cst_21 {dimension_numbers = #tpu.dot_dimension_numbers<[1], [1], [0], [0], [0, 0, 1, 0], [], []>} : vector<32x16xf32>, vector<32x16xf32>, vector<32x32xf32> -> vector<32x32xf32>
    %34 = arith.addf %32, %33 : vector<32x32xf32>
    %c0_22 = arith.constant 0 : index
    %c0_23 = arith.constant 0 : index
    %35 = vector.load %arg8[%c0_22, %c0_23] : memref<32x32xf32, #tpu.memory_space<vmem>>, vector<32x32xf32>
    tpu.vector_store %arg8[%c0_22, %c0_23], %34 {strides = array<i32>} : memref<32x32xf32, #tpu.memory_space<vmem>>, vector<32x32xf32>,
    %c0_24 = arith.constant 0 : index
    %c0_25 = arith.constant 0 : index
    %36 = vector.load %arg9[%c0_24, %c0_25] : memref<32x32xf32, #tpu.memory_space<vmem>>, vector<32x32xf32>
    %cst_26 = arith.constant dense<0.000000e+00> : vector<32x32xf32>
    %37 = tpu.matmul %17, %17, %cst_26 {dimension_numbers = #tpu.dot_dimension_numbers<[1], [1], [0], [0], [0, 0, 1, 0], [], []>} : vector<32x16xf32>, vector<32x16xf32>, vector<32x32xf32> -> vector<32x32xf32>
    %38 = arith.addf %36, %37 : vector<32x32xf32>
    %c0_27 = arith.constant 0 : index
    %c0_28 = arith.constant 0 : index
    %39 = vector.load %arg9[%c0_27, %c0_28] : memref<32x32xf32, #tpu.memory_space<vmem>>, vector<32x32xf32>
    tpu.vector_store %arg9[%c0_27, %c0_28], %38 {strides = array<i32>} : memref<32x32xf32, #tpu.memory_space<vmem>>, vector<32x32xf32>,
    %c0_29 = arith.constant 0 : index
    %c0_30 = arith.constant 0 : index
    %40 = memref.load %arg5[%c0_29, %c0_30] : memref<1x1xf32, #tpu.memory_space<smem>>
    %cst_31 = arith.constant 9.765625E-4 : f32
    %41 = arith.mulf %31, %cst_31 : f32
    %42 = arith.addf %40, %41 : f32
    %c0_32 = arith.constant 0 : index
    %c0_33 = arith.constant 0 : index
    %43 = memref.load %arg5[%c0_32, %c0_33] : memref<1x1xf32, #tpu.memory_space<smem>>
    memref.store %42, %arg5[%c0_32, %c0_33] : memref<1x1xf32, #tpu.memory_space<smem>>
    %c0_i32_34 = arith.constant 0 : i32
    %44 = arith.cmpi eq, %arg1, %c0_i32_34 : i32
    %45 = arith.extui %44 : i1 to i32
    %c0_i32_35 = arith.constant 0 : i32
    %46 = arith.cmpi ne, %45, %c0_i32_35 : i32
    scf.if %46 {
      %c0_36 = arith.constant 0 : index
      %c0_37 = arith.constant 0 : index
      %47 = vector.load %arg7[%c0_36, %c0_37] : memref<32x32xf32, #tpu.memory_space<vmem>>, vector<32x32xf32>
      %cst_38 = arith.constant 0.001953125 : f32
      %48 = vector.broadcast %cst_38 : f32 to vector<32x32xf32>
      %49 = arith.mulf %47, %48 : vector<32x32xf32>
      %c0_39 = arith.constant 0 : index
      %c0_40 = arith.constant 0 : index
      %50 = vector.load %arg8[%c0_39, %c0_40] : memref<32x32xf32, #tpu.memory_space<vmem>>, vector<32x32xf32>
      %cst_41 = arith.constant 0.001953125 : f32
      %51 = vector.broadcast %cst_41 : f32 to vector<32x32xf32>
      %52 = arith.mulf %50, %51 : vector<32x32xf32>
      %c0_42 = arith.constant 0 : index
      %c0_43 = arith.constant 0 : index
      %53 = vector.load %arg9[%c0_42, %c0_43] : memref<32x32xf32, #tpu.memory_space<vmem>>, vector<32x32xf32>
      %cst_44 = arith.constant 0.001953125 : f32
      %54 = vector.broadcast %cst_44 : f32 to vector<32x32xf32>
      %55 = arith.mulf %53, %54 : vector<32x32xf32>
      %56 = arith.subf %52, %49 : vector<32x32xf32>
      %57 = math.absf %56 : vector<32x32xf32>
      %58 = vector.shape_cast %57 : vector<32x32xf32> to vector<1x32x32xf32>
      %cst_45 = arith.constant dense<0.000000e+00> : vector<1xf32>
      %59 = vector.multi_reduction <add>, %58, %cst_45 [1, 2] : vector<1x32x32xf32> to vector<1xf32>
      %60 = vector.shape_cast %59 : vector<1xf32> to vector<1x1x1xf32>
      %61 = vector.extract %60[0, 0, 0] : f32 from vector<1x1x1xf32>
      %cst_46 = arith.constant 0.000000e+00 : f32
      %62 = arith.addf %cst_46, %61 : f32
      %63 = arith.subf %55, %49 : vector<32x32xf32>
      %64 = math.absf %63 : vector<32x32xf32>
      %65 = vector.shape_cast %64 : vector<32x32xf32> to vector<1x32x32xf32>
      %cst_47 = arith.constant dense<0.000000e+00> : vector<1xf32>
      %66 = vector.multi_reduction <add>, %65, %cst_47 [1, 2] : vector<1x32x32xf32> to vector<1xf32>
      %67 = vector.shape_cast %66 : vector<1xf32> to vector<1x1x1xf32>
      %68 = vector.extract %67[0, 0, 0] : f32 from vector<1x1x1xf32>
      %69 = arith.addf %62, %68 : f32
      %c0_48 = arith.constant 0 : index
      %c0_49 = arith.constant 0 : index
      %70 = memref.load %arg6[%c0_48, %c0_49] : memref<1x1xf32, #tpu.memory_space<smem>>
      %cst_50 = arith.constant 4.8828125E-4 : f32
      %71 = arith.mulf %69, %cst_50 : f32
      %72 = arith.addf %70, %71 : f32
      %c0_51 = arith.constant 0 : index
      %c0_52 = arith.constant 0 : index
      %73 = memref.load %arg6[%c0_51, %c0_52] : memref<1x1xf32, #tpu.memory_space<smem>>
      memref.store %72, %arg6[%c0_51, %c0_52] : memref<1x1xf32, #tpu.memory_space<smem>>
    } else {
    }
    return
  }
  func.func @transform_0(%arg0: i32, %arg1: i32) -> (i32, i32, i32) {
    %c0_i32 = arith.constant 0 : i32
    %c0_i32_0 = arith.constant 0 : i32
    return %arg0, %c0_i32, %arg1 : i32, i32, i32
  }
  func.func @transform_1(%arg0: i32, %arg1: i32) -> (i32, i32, i32) {
    %c0_i32 = arith.constant 0 : i32
    %c0_i32_0 = arith.constant 0 : i32
    return %arg0, %c0_i32, %arg1 : i32, i32, i32
  }
  func.func @transform_2(%arg0: i32, %arg1: i32) -> (i32, i32, i32) {
    %c0_i32 = arith.constant 0 : i32
    %c0_i32_0 = arith.constant 0 : i32
    return %arg0, %c0_i32, %arg1 : i32, i32, i32
  }
  func.func @transform_3(%arg0: i32, %arg1: i32) -> (i32, i32) {
    %c0_i32 = arith.constant 0 : i32
    %c0_i32_0 = arith.constant 0 : i32
    %c0_i32_1 = arith.constant 0 : i32
    return %c0_i32, %c0_i32_0 : i32, i32
  }
  func.func @transform_4(%arg0: i32, %arg1: i32) -> (i32, i32) {
    %c0_i32 = arith.constant 0 : i32
    %c0_i32_0 = arith.constant 0 : i32
    %c0_i32_1 = arith.constant 0 : i32
    return %c0_i32, %c0_i32_0 : i32, i32
  }
}

module attributes {stable_mosaic.version = 11 : i64} {
  func.func @kernel(%arg0: i32, %arg1: i32, %arg2: memref<1x16x64xf32, #tpu.memory_space<vmem>>, %arg3: memref<1x16x64xf32, #tpu.memory_space<vmem>>, %arg4: memref<1x16x64xf32, #tpu.memory_space<vmem>>, %arg5: memref<1x1xf32, #tpu.memory_space<smem>>, %arg6: memref<1x1xf32, #tpu.memory_space<smem>>, %arg7: memref<16x16xf32, #tpu.memory_space<vmem>>, %arg8: memref<16x16xf32, #tpu.memory_space<vmem>>, %arg9: memref<16x16xf32, #tpu.memory_space<vmem>>) attributes {dimension_semantics = [#tpu.dimension_semantics<arbitrary>, #tpu.dimension_semantics<arbitrary>], iteration_bounds = array<i64: 2, 1>, scalar_prefetch = 0 : i64, scratch_operands = 3 : i64, tpu.core_type = #tpu.core_type<tc>, window_params = [{transform_indices = @transform_0, window_bounds = array<i64: 1, 16, 64>}, {transform_indices = @transform_1, window_bounds = array<i64: 1, 16, 64>}, {transform_indices = @transform_2, window_bounds = array<i64: 1, 16, 64>}, {transform_indices = @transform_3, window_bounds = array<i64: 1, 1>}, {transform_indices = @transform_4, window_bounds = array<i64: 1, 1>}]} {
    %c0_i32 = arith.constant 0 : i32
    %0 = arith.cmpi eq, %arg0, %c0_i32 : i32
    %c0_i32_0 = arith.constant 0 : i32
    %1 = arith.cmpi eq, %arg1, %c0_i32_0 : i32
    %2 = arith.andi %0, %1 : i1
    %3 = arith.extui %2 : i1 to i32
    %c0_i32_1 = arith.constant 0 : i32
    %4 = arith.cmpi ne, %3, %c0_i32_1 : i32
    scf.if %4 {
      %cst_36 = arith.constant 0.000000e+00 : f32
      %c0_37 = arith.constant 0 : index
      %c0_38 = arith.constant 0 : index
      %47 = memref.load %arg5[%c0_37, %c0_38] : memref<1x1xf32, #tpu.memory_space<smem>>
      memref.store %cst_36, %arg5[%c0_37, %c0_38] : memref<1x1xf32, #tpu.memory_space<smem>>
      %cst_39 = arith.constant 0.000000e+00 : f32
      %c0_40 = arith.constant 0 : index
      %c0_41 = arith.constant 0 : index
      %48 = memref.load %arg6[%c0_40, %c0_41] : memref<1x1xf32, #tpu.memory_space<smem>>
      memref.store %cst_39, %arg6[%c0_40, %c0_41] : memref<1x1xf32, #tpu.memory_space<smem>>
    } else {
    }
    %c0_i32_2 = arith.constant 0 : i32
    %5 = arith.cmpi eq, %arg1, %c0_i32_2 : i32
    %6 = arith.extui %5 : i1 to i32
    %c0_i32_3 = arith.constant 0 : i32
    %7 = arith.cmpi ne, %6, %c0_i32_3 : i32
    scf.if %7 {
      %cst_36 = arith.constant 0.000000e+00 : f32
      %47 = vector.broadcast %cst_36 : f32 to vector<16x16xf32>
      %c0_37 = arith.constant 0 : index
      %c0_38 = arith.constant 0 : index
      %48 = vector.load %arg7[%c0_37, %c0_38] : memref<16x16xf32, #tpu.memory_space<vmem>>, vector<16x16xf32>
      tpu.vector_store %arg7[%c0_37, %c0_38], %47 {strides = array<i32>} : memref<16x16xf32, #tpu.memory_space<vmem>>, vector<16x16xf32>,
      %cst_39 = arith.constant 0.000000e+00 : f32
      %49 = vector.broadcast %cst_39 : f32 to vector<16x16xf32>
      %c0_40 = arith.constant 0 : index
      %c0_41 = arith.constant 0 : index
      %50 = vector.load %arg8[%c0_40, %c0_41] : memref<16x16xf32, #tpu.memory_space<vmem>>, vector<16x16xf32>
      tpu.vector_store %arg8[%c0_40, %c0_41], %49 {strides = array<i32>} : memref<16x16xf32, #tpu.memory_space<vmem>>, vector<16x16xf32>,
      %cst_42 = arith.constant 0.000000e+00 : f32
      %51 = vector.broadcast %cst_42 : f32 to vector<16x16xf32>
      %c0_43 = arith.constant 0 : index
      %c0_44 = arith.constant 0 : index
      %52 = vector.load %arg9[%c0_43, %c0_44] : memref<16x16xf32, #tpu.memory_space<vmem>>, vector<16x16xf32>
      tpu.vector_store %arg9[%c0_43, %c0_44], %51 {strides = array<i32>} : memref<16x16xf32, #tpu.memory_space<vmem>>, vector<16x16xf32>,
    } else {
    }
    %c0 = arith.constant 0 : index
    %c0_4 = arith.constant 0 : index
    %c0_5 = arith.constant 0 : index
    %8 = vector.load %arg2[%c0, %c0_4, %c0_5] : memref<1x16x64xf32, #tpu.memory_space<vmem>>, vector<1x16x64xf32>
    %9 = vector.shape_cast %8 : vector<1x16x64xf32> to vector<16x64xf32>
    %c0_6 = arith.constant 0 : index
    %c0_7 = arith.constant 0 : index
    %10 = vector.load %arg7[%c0_6, %c0_7] : memref<16x16xf32, #tpu.memory_space<vmem>>, vector<16x16xf32>
    %cst = arith.constant dense<0.000000e+00> : vector<16x16xf32>
    %11 = tpu.matmul %9, %9, %cst {dimension_numbers = #tpu.dot_dimension_numbers<[1], [1], [0], [0], [0, 0, 1, 0], [], []>} : vector<16x64xf32>, vector<16x64xf32>, vector<16x16xf32> -> vector<16x16xf32>
    %12 = arith.addf %10, %11 : vector<16x16xf32>
    %c0_8 = arith.constant 0 : index
    %c0_9 = arith.constant 0 : index
    %13 = vector.load %arg7[%c0_8, %c0_9] : memref<16x16xf32, #tpu.memory_space<vmem>>, vector<16x16xf32>
    tpu.vector_store %arg7[%c0_8, %c0_9], %12 {strides = array<i32>} : memref<16x16xf32, #tpu.memory_space<vmem>>, vector<16x16xf32>,
    %c0_10 = arith.constant 0 : index
    %c0_11 = arith.constant 0 : index
    %c0_12 = arith.constant 0 : index
    %14 = vector.load %arg3[%c0_10, %c0_11, %c0_12] : memref<1x16x64xf32, #tpu.memory_space<vmem>>, vector<1x16x64xf32>
    %15 = vector.shape_cast %14 : vector<1x16x64xf32> to vector<16x64xf32>
    %c0_13 = arith.constant 0 : index
    %c0_14 = arith.constant 0 : index
    %c0_15 = arith.constant 0 : index
    %16 = vector.load %arg4[%c0_13, %c0_14, %c0_15] : memref<1x16x64xf32, #tpu.memory_space<vmem>>, vector<1x16x64xf32>
    %17 = vector.shape_cast %16 : vector<1x16x64xf32> to vector<16x64xf32>
    %18 = arith.subf %15, %9 : vector<16x64xf32>
    %19 = math.absf %18 : vector<16x64xf32>
    %20 = vector.shape_cast %19 : vector<16x64xf32> to vector<1x16x64xf32>
    %cst_16 = arith.constant dense<0.000000e+00> : vector<1xf32>
    %21 = vector.multi_reduction <add>, %20, %cst_16 [1, 2] : vector<1x16x64xf32> to vector<1xf32>
    %22 = vector.shape_cast %21 : vector<1xf32> to vector<1x1x1xf32>
    %23 = vector.extract %22[0, 0, 0] : f32 from vector<1x1x1xf32>
    %cst_17 = arith.constant 0.000000e+00 : f32
    %24 = arith.addf %cst_17, %23 : f32
    %25 = arith.subf %17, %9 : vector<16x64xf32>
    %26 = math.absf %25 : vector<16x64xf32>
    %27 = vector.shape_cast %26 : vector<16x64xf32> to vector<1x16x64xf32>
    %cst_18 = arith.constant dense<0.000000e+00> : vector<1xf32>
    %28 = vector.multi_reduction <add>, %27, %cst_18 [1, 2] : vector<1x16x64xf32> to vector<1xf32>
    %29 = vector.shape_cast %28 : vector<1xf32> to vector<1x1x1xf32>
    %30 = vector.extract %29[0, 0, 0] : f32 from vector<1x1x1xf32>
    %31 = arith.addf %24, %30 : f32
    %c0_19 = arith.constant 0 : index
    %c0_20 = arith.constant 0 : index
    %32 = vector.load %arg8[%c0_19, %c0_20] : memref<16x16xf32, #tpu.memory_space<vmem>>, vector<16x16xf32>
    %cst_21 = arith.constant dense<0.000000e+00> : vector<16x16xf32>
    %33 = tpu.matmul %15, %15, %cst_21 {dimension_numbers = #tpu.dot_dimension_numbers<[1], [1], [0], [0], [0, 0, 1, 0], [], []>} : vector<16x64xf32>, vector<16x64xf32>, vector<16x16xf32> -> vector<16x16xf32>
    %34 = arith.addf %32, %33 : vector<16x16xf32>
    %c0_22 = arith.constant 0 : index
    %c0_23 = arith.constant 0 : index
    %35 = vector.load %arg8[%c0_22, %c0_23] : memref<16x16xf32, #tpu.memory_space<vmem>>, vector<16x16xf32>
    tpu.vector_store %arg8[%c0_22, %c0_23], %34 {strides = array<i32>} : memref<16x16xf32, #tpu.memory_space<vmem>>, vector<16x16xf32>,
    %c0_24 = arith.constant 0 : index
    %c0_25 = arith.constant 0 : index
    %36 = vector.load %arg9[%c0_24, %c0_25] : memref<16x16xf32, #tpu.memory_space<vmem>>, vector<16x16xf32>
    %cst_26 = arith.constant dense<0.000000e+00> : vector<16x16xf32>
    %37 = tpu.matmul %17, %17, %cst_26 {dimension_numbers = #tpu.dot_dimension_numbers<[1], [1], [0], [0], [0, 0, 1, 0], [], []>} : vector<16x64xf32>, vector<16x64xf32>, vector<16x16xf32> -> vector<16x16xf32>
    %38 = arith.addf %36, %37 : vector<16x16xf32>
    %c0_27 = arith.constant 0 : index
    %c0_28 = arith.constant 0 : index
    %39 = vector.load %arg9[%c0_27, %c0_28] : memref<16x16xf32, #tpu.memory_space<vmem>>, vector<16x16xf32>
    tpu.vector_store %arg9[%c0_27, %c0_28], %38 {strides = array<i32>} : memref<16x16xf32, #tpu.memory_space<vmem>>, vector<16x16xf32>,
    %c0_29 = arith.constant 0 : index
    %c0_30 = arith.constant 0 : index
    %40 = memref.load %arg5[%c0_29, %c0_30] : memref<1x1xf32, #tpu.memory_space<smem>>
    %cst_31 = arith.constant 4.8828125E-4 : f32
    %41 = arith.mulf %31, %cst_31 : f32
    %42 = arith.addf %40, %41 : f32
    %c0_32 = arith.constant 0 : index
    %c0_33 = arith.constant 0 : index
    %43 = memref.load %arg5[%c0_32, %c0_33] : memref<1x1xf32, #tpu.memory_space<smem>>
    memref.store %42, %arg5[%c0_32, %c0_33] : memref<1x1xf32, #tpu.memory_space<smem>>
    %c0_i32_34 = arith.constant 0 : i32
    %44 = arith.cmpi eq, %arg1, %c0_i32_34 : i32
    %45 = arith.extui %44 : i1 to i32
    %c0_i32_35 = arith.constant 0 : i32
    %46 = arith.cmpi ne, %45, %c0_i32_35 : i32
    scf.if %46 {
      %c0_36 = arith.constant 0 : index
      %c0_37 = arith.constant 0 : index
      %47 = vector.load %arg7[%c0_36, %c0_37] : memref<16x16xf32, #tpu.memory_space<vmem>>, vector<16x16xf32>
      %cst_38 = arith.constant 9.765625E-4 : f32
      %48 = vector.broadcast %cst_38 : f32 to vector<16x16xf32>
      %49 = arith.mulf %47, %48 : vector<16x16xf32>
      %c0_39 = arith.constant 0 : index
      %c0_40 = arith.constant 0 : index
      %50 = vector.load %arg8[%c0_39, %c0_40] : memref<16x16xf32, #tpu.memory_space<vmem>>, vector<16x16xf32>
      %cst_41 = arith.constant 9.765625E-4 : f32
      %51 = vector.broadcast %cst_41 : f32 to vector<16x16xf32>
      %52 = arith.mulf %50, %51 : vector<16x16xf32>
      %c0_42 = arith.constant 0 : index
      %c0_43 = arith.constant 0 : index
      %53 = vector.load %arg9[%c0_42, %c0_43] : memref<16x16xf32, #tpu.memory_space<vmem>>, vector<16x16xf32>
      %cst_44 = arith.constant 9.765625E-4 : f32
      %54 = vector.broadcast %cst_44 : f32 to vector<16x16xf32>
      %55 = arith.mulf %53, %54 : vector<16x16xf32>
      %56 = arith.subf %52, %49 : vector<16x16xf32>
      %57 = math.absf %56 : vector<16x16xf32>
      %58 = vector.shape_cast %57 : vector<16x16xf32> to vector<1x16x16xf32>
      %cst_45 = arith.constant dense<0.000000e+00> : vector<1xf32>
      %59 = vector.multi_reduction <add>, %58, %cst_45 [1, 2] : vector<1x16x16xf32> to vector<1xf32>
      %60 = vector.shape_cast %59 : vector<1xf32> to vector<1x1x1xf32>
      %61 = vector.extract %60[0, 0, 0] : f32 from vector<1x1x1xf32>
      %cst_46 = arith.constant 0.000000e+00 : f32
      %62 = arith.addf %cst_46, %61 : f32
      %63 = arith.subf %55, %49 : vector<16x16xf32>
      %64 = math.absf %63 : vector<16x16xf32>
      %65 = vector.shape_cast %64 : vector<16x16xf32> to vector<1x16x16xf32>
      %cst_47 = arith.constant dense<0.000000e+00> : vector<1xf32>
      %66 = vector.multi_reduction <add>, %65, %cst_47 [1, 2] : vector<1x16x16xf32> to vector<1xf32>
      %67 = vector.shape_cast %66 : vector<1xf32> to vector<1x1x1xf32>
      %68 = vector.extract %67[0, 0, 0] : f32 from vector<1x1x1xf32>
      %69 = arith.addf %62, %68 : f32
      %c0_48 = arith.constant 0 : index
      %c0_49 = arith.constant 0 : index
      %70 = memref.load %arg6[%c0_48, %c0_49] : memref<1x1xf32, #tpu.memory_space<smem>>
      %cst_50 = arith.constant 0.001953125 : f32
      %71 = arith.mulf %69, %cst_50 : f32
      %72 = arith.addf %70, %71 : f32
      %c0_51 = arith.constant 0 : index
      %c0_52 = arith.constant 0 : index
      %73 = memref.load %arg6[%c0_51, %c0_52] : memref<1x1xf32, #tpu.memory_space<smem>>
      memref.store %72, %arg6[%c0_51, %c0_52] : memref<1x1xf32, #tpu.memory_space<smem>>
    } else {
    }
    return
  }
  func.func @transform_0(%arg0: i32, %arg1: i32) -> (i32, i32, i32) {
    %c0_i32 = arith.constant 0 : i32
    %c0_i32_0 = arith.constant 0 : i32
    return %arg0, %c0_i32, %arg1 : i32, i32, i32
  }
  func.func @transform_1(%arg0: i32, %arg1: i32) -> (i32, i32, i32) {
    %c0_i32 = arith.constant 0 : i32
    %c0_i32_0 = arith.constant 0 : i32
    return %arg0, %c0_i32, %arg1 : i32, i32, i32
  }
  func.func @transform_2(%arg0: i32, %arg1: i32) -> (i32, i32, i32) {
    %c0_i32 = arith.constant 0 : i32
    %c0_i32_0 = arith.constant 0 : i32
    return %arg0, %c0_i32, %arg1 : i32, i32, i32
  }
  func.func @transform_3(%arg0: i32, %arg1: i32) -> (i32, i32) {
    %c0_i32 = arith.constant 0 : i32
    %c0_i32_0 = arith.constant 0 : i32
    %c0_i32_1 = arith.constant 0 : i32
    return %c0_i32, %c0_i32_0 : i32, i32
  }
  func.func @transform_4(%arg0: i32, %arg1: i32) -> (i32, i32) {
    %c0_i32 = arith.constant 0 : i32
    %c0_i32_0 = arith.constant 0 : i32
    %c0_i32_1 = arith.constant 0 : i32
    return %c0_i32, %c0_i32_0 : i32, i32
  }
}

</mosaic_0001>

<bundles_post_ra>
// kernel: _inpainting_loss_impl.5
= control target key start
LH: loop header
LB: loop body
LE: loop exit
PB: predicated region body
PF: predicated region fallthrough
CT: control target
= control target key end

     0   :  { %10 = vsyncpa [#allocation6], 0  ;;  %s969_s0 = inlined_call_operand.vmem [shape: f32[2,8,256], index: 0, kind: input, shape index: {}]   ;;  %s970_s1 = inlined_call_operand.vmem [shape: f32[2,8,256], index: 1, kind: input, shape index: {}]   ;;  %s971_s2 = inlined_call_operand.vmem [shape: f32[2,8,256], index: 2, kind: input, shape index: {}]   ;;  %s972_s3 = inlined_call_operand.hbm [shape: f32[1,1], index: 3, kind: output, shape index: {0}]   ;;  %s973_s4 = inlined_call_operand.hbm [shape: f32[1,1], index: 4, kind: output, shape index: {1}]  }
   0x1   :  { %11 = vsyncpa [#allocation8], 0  ;;  %s873_s15 = smov 0   ;;  %s875_s16 = smov 0  }
   0x2   :  { %s877_s17 = smov 0  }
   0x3 LB: > { %s717_s18 = sadd.s32 4294967295, %s842_s17   ;;  %s29_s19 = sadd.s32 1, %s838_s16  ;;  %s842_s17 = sphi %s877_s17, %s17_s17   ;;  %s838_s16 = sphi %s875_s16, %s976_s16   ;;  %s834_s15 = sphi %s873_s15, %s975_s15  }
   0x4   : > { %p31_p0 = scmp.ge.s32.totalorder %s29_s19, 2  ;;  %p720_p1 = scmp.ge.s32.totalorder %s842_s17, 1 }
   0x5   : > { %p210_p2 = scmp.lt.s32.totalorder %s842_s17, 3 }
   0x6   : > { %s978_s19 = smov (%p31_p0, %s29_s19), 0 }
   0x7   : > { %p211_p3 = pnand %p720_p1, %p210_p2 }
   0x8   : > { %p254_p4 = scmp.lt.s32.totalorder (!%p211_p3), %s834_s15, 1  ;;  %vm296_vm0 = vcmask (!%p211_p3), 64512   ;;  %v844_v0 = vmov (!%p211_p3), 0.0   ;;  %p283_p5 = scmp.eq.s32.totalorder (!%p211_p3), %s834_s15, 0 }
   0x9   : > { %214 = sbr.rel (%p211_p3) target bundleno = 478 (0x1de), region = 32  ;;  %297 = vst.msk [vmem:[#allocation2] sm:$0xff] (!%p211_p3), %vm296_vm0, %v844_v0  ;;  %298 = vst.msk [vmem:[#allocation3] sm:$0xff] (!%p211_p3), %vm296_vm0, %v844_v0  ;;  %s845_s5 = smov (!%p211_p3), 0.0  }
   0xa   : > { %299 = vst.msk [vmem:[#allocation4] sm:$0xff] (!%p211_p3), %vm296_vm0, %v844_v0  ;;  %p916_p6 = scmp.eq.s32.totalorder (!%p211_p3), %s717_s18, 1 }
  0x10   : > { %s255_s20 = scalar_select %p254_p4, %s834_s15, 1  ;;  %v302_v17 = vld [vmem:[#allocation2] sm:$0xff]  ;;  %v410_v18 = vld [vmem:[#allocation3] sm:$0xff] }
  0x11   : > { %v483_v25 = vld [vmem:[#allocation4] sm:$0xff]  ;;  %746 = sst [smem:[#allocation5]] (%p283_p5), %s845_s5  ;;  %s788_s15 = scalar_lea.hbm %s972_s3, 16 }
  0x12   : > { %s734_s21 = sshll.u32 %s255_s20, 4  ;;  %747 = sst [smem:[#allocation7]] (%p283_p5), %s845_s5 }
  0x13   : > { %s261_s24 = scalar_lea.vmem %s969_s0, %s734_s21  ;;  %s271_s27 = scalar_lea.vmem %s970_s1, %s734_s21 }
  0x14   : > { %v301_v1 = vld [vmem:[%s261_s24 + $0x8] sm:$0xff]  ;;  %v300_v3 = vld [vmem:[%s261_s24] sm:$0xff]  ;;  %s281_s30 = scalar_lea.vmem %s971_s2, %s734_s21  ;;  %s556_s6 = sld [smem:[#allocation5]] }
  0x15   : > { %v377_v2 = vld [vmem:[%s271_s27 + $0x8] sm:$0xff]  ;;  %303 = vmatprep.subr.mxu0 %v301_v1  ;;  %v376_v4 = vld [vmem:[%s271_s27] sm:$0xff]  ;;  %367 = vmatprep.mubr.f32.mxu0 %v301_v1  ;;  %p789_p7 = scmp.ne.s32.totalorder %s972_s3, %s788_s15  ;;  %p794_p10 = scmp.lt.u32.totalorder %s788_s15, %s972_s3 }
  0x16   : > { %411 = vmatprep.subr.mxu1 %v377_v2  ;;  %v379_v5 = vld [vmem:[%s281_s30 + $0x8] sm:$0xff]  ;;  %304 = vmatpush1.xpose.msra.mxu0 %v300_v3  ;;  %v378_v6 = vld [vmem:[%s281_s30] sm:$0xff]  ;;  %v380_v7 = vsub.f32 %v376_v4, %v300_v3  ;;  %v381_v8 = vsub.f32 %v377_v2, %v301_v1 }
  0x17   : > { %412 = vmatpush1.xpose.msra.mxu1 %v376_v4  ;;  %475 = vmatprep.mubr.f32.mxu1 %v377_v2  ;;  %v395_v12 = vsub.f32 %v378_v6, %v300_v3  ;;  %v396_v13 = vsub.f32 %v379_v5, %v301_v1  ;;  %p790_p8 = pnand %p789_p7, %p916_p6 }
  0x18   : > { %484 = vmatprep.subr.mxu0 %v379_v5  ;;  %v382_v9 = vand.u32 2147483647, %v380_v7  ;;  %v383_v10 = vand.u32 2147483647, %v381_v8 }
  0x19   : > { %368 = vmatmul.mubr.f32.vlgmr.msra.gmra.mrb[0].mxu0 %v300_v3  ;;  %v397_v14 = vand.u32 2147483647, %v395_v12  ;;  %v398_v15 = vand.u32 2147483647, %v396_v13  ;;  %p791_p9 = pneg %p790_p8 }
  0x1a   : > { %476 = vmatmul.mubr.f32.vlgmr.msra.gmra.mrb[0].mxu1 %v376_v4  ;;  %485 = vmatpush1.xpose.msra.mxu0 %v378_v6  ;;  %v384_v11 = vadd.f32 %v383_v10, %v382_v9 }
  0x1b   : > { %548 = vmatprep.mubr.f32.mxu0 %v379_v5  ;;  %v399_v16 = vadd.f32 %v398_v15, %v397_v14  ;;  %p796_p11 = pnand %p794_p10, %p791_p9 }
  0x1c   : > { %385 = vadd.xlane.f32.xlu0 %v384_v11 }
  0x1d   : > { %549 = vmatmul.mubr.f32.vlgmr.msra.gmra.mrb[2].mxu0 %v378_v6 }
  0x20   : > { %400 = vadd.xlane.f32.xlu0 %v399_v16 }
  0xa9   : > { %v386_v41 = vpop.xlane.xlu0 %385 }
  0xaa   : > { %v387_v42 = vrot.slane %v386_v41, 4 }
  0xac   : > { %v388_v43 = vadd.f32 %v387_v42, %v386_v41 }
  0xad   : > { %v401_v44 = vpop.xlane.xlu0 %400 }
  0xae   : > { %v402_v45 = vrot.slane %v401_v44, 4  ;;  %v389_v46 = vrot.slane %v388_v43, 2 }
  0xb0   : > { %v403_v47 = vadd.f32 %v402_v45, %v401_v44  ;;  %v390_v50 = vadd.f32 %v389_v46, %v388_v43 }
  0xb2   : > { %v404_v48 = vrot.slane %v403_v47, 2  ;;  %v391_v51 = vrot.slane %v390_v50, 1 }
  0xb4   : > { %v405_v49 = vadd.f32 %v404_v48, %v403_v47  ;;  %v392_v53 = vadd.f32 %v391_v51, %v390_v50 }
  0xb6   : > { %v406_v52 = vrot.slane %v405_v49, 1  ;;  %738 = vpush %v392_v53 }
  0xb8   : > { %v407_v54 = vadd.f32 %v406_v52, %v405_v49 }
  0xba   : > { %740 = vpush %v407_v54 }
  0xe7   : > { %s739_s7 = spop %738 }
  0xeb   : > { %s741_s8 = spop %740 }
  0xec   : > { %v369_v19 = vpop.f32.mrb[0].mxu0  ;;  %s409_s9 = sadd.f32 %s741_s8, %s739_s7 }
  0xed   : > { %v477_v20 = vpop.f32.mrb[0].mxu1  ;;  %v373_v21 = vadd.f32 %v369_v19, %v302_v17  ;;  %v371_v23 = vpop.f32.mrb[1].mxu0 }
  0xee   : > { %v481_v22 = vadd.f32 %v477_v20, %v410_v18  ;;  %v479_v24 = vpop.f32.mrb[1].mxu1  ;;  %s557_s10 = smul.f32 0.00024414063, %s409_s9 }
  0xef   : > { %375 = vst.msk [vmem:[#allocation2] sm:$0xff] %vm296_vm0, %v373_v21 }
  0xf0   : > { %482 = vst.msk [vmem:[#allocation3] sm:$0xff] %vm296_vm0, %v481_v22  ;;  %v550_v26 = vpop.f32.mrb[2].mxu0  ;;  %s558_s11 = sadd.f32 %s557_s10, %s556_s6 }
  0xf1   : > { %v554_v27 = vadd.f32 %v550_v26, %v483_v25  ;;  %v552_v28 = vpop.f32.mrb[3].mxu0 }
  0xf2   : > { %560 = sst [smem:[#allocation5]] %s558_s11 }
  0xf3   : > { %555 = vst.msk [vmem:[#allocation4] sm:$0xff] %vm296_vm0, %v554_v27 }
  0xf6   : > { %v564_v29 = vld [vmem:[#allocation2] sm:$0xff] }
  0xf7   : > { %v566_v30 = vld [vmem:[#allocation3] sm:$0xff]  ;;  %v565_v31 = vmul.f32 0.00048828125, %v564_v29 }
  0xf8   : > { %v567_v32 = vmul.f32 0.00048828125, %v566_v30 }
  0xfa   : > { %v570_v33 = vsub.f32 %v567_v32, %v565_v31  ;;  %v568_v34 = vld [vmem:[#allocation4] sm:$0xff] }
  0xfb   : > { %v569_v36 = vmul.f32 0.00048828125, %v568_v34 }
  0xfc   : > { %v571_v35 = vand.u32 2147483647, %v570_v33 }
  0xfd   : > { %v583_v38 = vsub.f32 %v569_v36, %v565_v31 }
  0xfe   : > { %v572_v37 = vsel %vm296_vm0, %v571_v35, 0.0 }
  0xff   : > { %573 = vadd.xlane.f32.xlu1 %v572_v37  ;;  %v584_v39 = vand.u32 2147483647, %v583_v38 }
 0x101   : > { %v585_v40 = vsel %vm296_vm0, %v584_v39, 0.0 }
 0x103   : > { %586 = vadd.xlane.f32.xlu1 %v585_v40 }
 0x104   : > { %799 = shalt.err (!%p796_p11)
}
 0x105   : > { %s846_s18 = smov [#allocation5]   ;;  %s596_s26 = sld [smem:[#allocation7]] }
 0x106   : > { %749 = dma.smem_to_hbm (%p916_p6), %s846_s18, 16, %s972_s3, [#allocation6]  }
 0x107   : > { %s800_s8 = scalar_lea.hbm %s973_s4, 16 }
 0x108   : > { %p801_p12 = scmp.ne.s32.totalorder %s973_s4, %s800_s8  ;;  %p806_p1 = scmp.lt.u32.totalorder %s800_s8, %s973_s4 }
 0x10a   : > { %p802_p13 = pnand %p801_p12, %p916_p6 }
 0x10c   : > { %p803_p0 = pneg %p802_p13 }
 0x10e   : > { %p808_p2 = pnand %p806_p1, %p803_p0 }
 0x18c   : > { %v574_v55 = vpop.xlane.xlu1 %573 }
 0x18d   : > { %v575_v56 = vrot.slane %v574_v55, 4 }
 0x18f   : > { %v576_v57 = vadd.f32 %v575_v56, %v574_v55 }
 0x190   : > { %v587_v58 = vpop.xlane.xlu1 %586 }
 0x191   : > { %v577_v59 = vrot.slane %v576_v57, 2  ;;  %v588_v60 = vrot.slane %v587_v58, 4 }
 0x193   : > { %v589_v61 = vadd.f32 %v588_v60, %v587_v58  ;;  %v578_v62 = vadd.f32 %v577_v59, %v576_v57 }
 0x195   : > { %v590_v63 = vrot.slane %v589_v61, 2  ;;  %v579_v0 = vrot.slane %v578_v62, 1 }
 0x197   : > { %v591_v1 = vadd.f32 %v590_v63, %v589_v61  ;;  %v580_v2 = vadd.f32 %v579_v0, %v578_v62 }
 0x199   : > { %742 = vpush %v580_v2  ;;  %v592_v3 = vrot.slane %v591_v1, 1 }
 0x19b   : > { %v593_v4 = vadd.f32 %v592_v3, %v591_v1 }
 0x19d   : > { %744 = vpush %v593_v4 }
 0x1ca   : > { %s743_s27 = spop %742 }
 0x1ce   : > { %s745_s28 = spop %744 }
 0x1cf   : > { %s595_s29 = sadd.f32 %s745_s28, %s743_s27 }
 0x1d1   : > { %s597_s30 = smul.f32 0.0078125, %s595_s29 }
 0x1d3   : > { %s598_s5 = sadd.f32 %s597_s30, %s596_s26 }
 0x1d5   : > { %600 = sst [smem:[#allocation7]] %s598_s5 }
 0x1d6   : > { %811 = shalt.err (!%p808_p2)
}
 0x1d7   : > { %s847_s14 = smov [#allocation7]  }
 0x1d8   : > { %751 = dma.smem_to_hbm (%p916_p6), %s847_s14, 16, %s973_s4, [#allocation8]  }
 0x1d9   : > { %825 = dma.done.wait (%p916_p6), [#allocation6], 16  }
 0x1da   : > { %827 = vsyncadd (%p916_p6), [#allocation6], 4294967280 }
 0x1db   : > { %829 = dma.done.wait (%p916_p6), [#allocation8], 16  }
 0x1dc   : > { %831 = vsyncadd (%p916_p6), [#allocation8], 4294967280 }
 0x1dd   : > { %627 = sfence }
 0x1de PF: > { %s17_s17 = sadd.s32 1, %s842_s17   ;;  %s975_s15 = smov %s838_s16 }
 0x1df   : > { %p14_p3 = scmp.ge.s32.totalorder %s17_s17, 4   ;;  %s976_s16 = smov %s978_s19 }
 0x1e1   :  { %16 = sbr.rel (!%p14_p3) target bundleno = 3 (0x3), region = 89 }
 0x1e8   :  { %633 = vsyncpa [#allocation6], 1 }
 0x1e9   :  { %635 = vsyncpa [#allocation6 + $0x1], 1 }
 0x1ea   :  { %636 = vsyncpa [#allocation8], 1 }

// kernel: _inpainting_loss_impl.4
= control target key start
LH: loop header
LB: loop body
LE: loop exit
PB: predicated region body
PF: predicated region fallthrough
CT: control target
= control target key end

     0   :  { %13 = vsyncpa [#allocation3], 0  ;;  %s1153_s0 = inlined_call_operand.vmem [shape: f32[2,1,256], index: 0, kind: input, shape index: {}]   ;;  %s1154_s1 = inlined_call_operand.vmem [shape: f32[2,3,256], index: 1, kind: input, shape index: {}]   ;;  %s1155_s2 = inlined_call_operand.vmem [shape: f32[2,3,256], index: 2, kind: input, shape index: {}]   ;;  %s1156_s3 = inlined_call_operand.vmem [shape: f32[2,3,256], index: 3, kind: input, shape index: {}]   ;;  %s1157_s4 = inlined_call_operand.vmem [shape: f32[2,3,256], index: 4, kind: input, shape index: {}]   ;;  %s1158_s5 = inlined_call_operand.hbm [shape: f32[1,1], index: 5, kind: output, shape index: {0}]   ;;  %s1159_s6 = inlined_call_operand.hbm [shape: f32[1,1], index: 6, kind: output, shape index: {1}]   ;;  %s1160_s7 = inlined_call_operand.hbm [shape: f32[1,1], index: 7, kind: output, shape index: {2}]  }
   0x1   :  { %14 = vsyncpa [#allocation5], 0  ;;  %s1011_s24 = smov 0   ;;  %s1013_s25 = smov 0  }
   0x2   :  { %s1015_s26 = smov 0  }
   0x3 LB: > { %s805_s27 = sadd.s32 4294967295, %s963_s26   ;;  %s32_s28 = sadd.s32 1, %s959_s25  ;;  %s963_s26 = sphi %s1015_s26, %s20_s26   ;;  %s959_s25 = sphi %s1013_s25, %s1163_s25   ;;  %s955_s24 = sphi %s1011_s24, %s1162_s24  }
   0x4   : > { %p34_p0 = scmp.ge.s32.totalorder %s32_s28, 2  ;;  %p808_p1 = scmp.ge.s32.totalorder %s963_s26, 1 }
   0x5   : > { %p315_p2 = scmp.lt.s32.totalorder %s963_s26, 3 }
   0x6   : > { %s1165_s28 = smov (%p34_p0, %s32_s28), 0 }
   0x7   : > { %p316_p3 = pnand %p808_p1, %p315_p2 }
   0x8   : > { %p382_p4 = scmp.lt.s32.totalorder (!%p316_p3), %s955_s24, 1  ;;  %v446_v0 = vlaneseq (!%p316_p3)  ;;  %s965_s18 = smov (!%p316_p3), 112   ;;  %vm475_vm0 = vcmask (!%p316_p3), 1042432  }
   0x9   : > { %319 = sbr.rel (%p316_p3) target bundleno = 378 (0x17a), region = 40  ;;  %s966_s19 = smov (!%p316_p3), 127  }
   0xa   : > { %v459_v1 = vshrl.u32 (!%p316_p3), %v446_v0, 7  ;;  %v447_v54 = vand.u32 (!%p316_p3), 127, %v446_v0  ;;  %p430_p5 = scmp.eq.s32.totalorder (!%p316_p3), %s955_s24, 0  ;;  %p1084_p6 = scmp.eq.s32.totalorder (!%p316_p3), %s805_s27, 1 }
   0xb   : > { %s897_s23 = scalar_lea.hbm (!%p316_p3), %s1159_s6, 16 }
   0xc   : > { %v460_v2 = vsub.s32 (!%p316_p3), 0, %v459_v1  ;;  %v464_v3 = vsub.s32 (!%p316_p3), 1, %v459_v1  ;;  %v448_v55 = vadd.s32 (!%p316_p3), 128, %v447_v54  ;;  %vm598_vm1 = vcmp.lt.s32.totalorder (!%p316_p3), %v447_v54, 112  ;;  %p898_p7 = scmp.ne.s32.totalorder (!%p316_p3), %s1159_s6, %s897_s23  ;;  %p903_p10 = scmp.lt.u32.totalorder (!%p316_p3), %s897_s23, %s1159_s6 }
   0xd   : > { %vm572_vm2 = vcmp.lt.s32.totalorder (!%p316_p3), %v447_v54, 127  ;;  %v449_v58 = vand.u32 (!%p316_p3), 15, %v447_v54 }
   0xe   : > { %v450_v59 = vand.u32 (!%p316_p3), 15, %v448_v55  ;;  %vm454_vm5 = vcmp.lt.s32.totalorder (!%p316_p3), %v448_v55, 240  ;;  %p899_p8 = pnand (!%p316_p3), %p898_p7, %p1084_p6 }
   0xf   : > { %vm451_vm3 = vcmp.ne.s32.totalorder (!%p316_p3), %v449_v58, 15 }
  0x10   : > { %s383_s29 = scalar_select %p382_p4, %s955_s24, 1  ;;  %vm452_vm4 = vcmp.ne.s32.totalorder %v450_v59, 15 }
  0x11   : > { %p900_p9 = pneg %p899_p8 }
  0x12   : > { %s809_s30 = sshll.u32 %s383_s29, 1  ;;  %s1035_s8 = sshll.u32 %s383_s29, 3 }
  0x13   : > { %s388_s11 = scalar_lea.vmem %s1153_s0, %s809_s30  ;;  %s408_s14 = scalar_lea.vmem %s1155_s2, %s1035_s8 }
  0x14   : > { %s428_s17 = scalar_lea.vmem %s1157_s4, %s1035_s8  ;;  %v442_v4 = vld [vmem:[%s388_s11] sm:$0x3]  ;;  %s398_s22 = scalar_lea.vmem %s1154_s1, %s1035_s8 }
  0x15   : > { %v444_v5 = vld [vmem:[%s408_s14] sm:$0x77]  ;;  %v445_v6 = vsub.f32 1.0, %v442_v4  ;;  %v493_v7 = vrot.slane %v442_v4, %v460_v2  ;;  %v497_v9 = vrot.slane %v442_v4, %v464_v3  ;;  %s418_s30 = scalar_lea.vmem %s1156_s3, %s1035_s8  ;;  %s967_s8 = smov 0.0  }
  0x16   : > { %v517_v8 = vld [vmem:[%s428_s17] sm:$0x77]  ;;  %v557_v10 = vcombine.high %v444_v5, %v444_v5  ;;  %844 = sst [smem:[#allocation2]] (%p430_p5), %s967_s8  ;;  %p905_p11 = pnand %p903_p10, %p900_p9 }
  0x17   : > { %v562_v11 = vcombine.high %v517_v8, %v517_v8  ;;  %v461_v12 = vrot.slane %v445_v6, %v460_v2  ;;  %v559_v13 = vmul.f32 %v493_v7, %v444_v5  ;;  %v465_v14 = vrot.slane %v445_v6, %v464_v3  ;;  %v443_v20 = vld [vmem:[%s398_s22] sm:$0x77]  ;;  %845 = sst [smem:[#allocation4]] (%p430_p5), %s967_s8 }
  0x18   : > { %v560_v16 = vmul.f32 %v557_v10, %v497_v9  ;;  %v455_v21 = vld [vmem:[%s418_s30] sm:$0x77]  ;;  %v518_v24 = vsub.f32 %v517_v8, %v443_v20  ;;  %846 = sst [smem:[#allocation6]] (%p430_p5), %s967_s8 }
  0x19   : > { %v564_v15 = vmul.f32 %v517_v8, %v461_v12  ;;  %v565_v17 = vmul.f32 %v562_v11, %v465_v14  ;;  %v456_v22 = vsub.f32 %v455_v21, %v443_v20  ;;  %s620_s9 = sld [smem:[#allocation2]] }
  0x1a   : > { %v520_v27 = vcombine.high %v518_v24, %v518_v24  ;;  %v522_v28 = vmul.f32 %v518_v24, %v461_v12  ;;  %v539_v35 = vmul.f32 %v518_v24, %v493_v7  ;;  %s625_s11 = sld [smem:[#allocation4]] }
  0x1b   : > { %v1048_v18 = vadd.f32 %v564_v15, %v559_v13  ;;  %v1052_v19 = vadd.f32 %v565_v17, %v560_v16  ;;  %v469_v23 = vcombine.high %v456_v22, %v456_v22  ;;  %v471_v25 = vmul.f32 %v461_v12, %v456_v22 }
  0x1c   : > { %v523_v31 = vmul.f32 %v520_v27, %v465_v14  ;;  %v500_v32 = vmul.f32 %v493_v7, %v456_v22  ;;  %v524_v34 = vand.u32 2147483647, %v522_v28  ;;  %v540_v39 = vmul.f32 %v520_v27, %v497_v9 }
  0x1d   : > { %594 = vrot.lane.b32.xlu1 %v1048_v18, %s965_s18  ;;  %568 = vrot.lane.b32.xlu0 %v1048_v18, %s966_s19  ;;  %v472_v26 = vmul.f32 %v469_v23, %v465_v14  ;;  %v473_v29 = vand.u32 2147483647, %v471_v25  ;;  %v501_v33 = vmul.f32 %v497_v9, %v469_v23  ;;  %v541_v45 = vand.u32 2147483647, %v539_v35 }
  0x1e   : > { %v525_v38 = vand.u32 2147483647, %v523_v31  ;;  %v502_v40 = vand.u32 2147483647, %v500_v32  ;;  %v526_v43 = vsel %vm475_vm0, %v524_v34, 0.0 }
  0x1f   : > { %v474_v30 = vand.u32 2147483647, %v472_v26  ;;  %v476_v36 = vsel %vm475_vm0, %v473_v29, 0.0  ;;  %v503_v41 = vand.u32 2147483647, %v501_v33  ;;  %v543_v51 = vsel %vm475_vm0, %v541_v45, 0.0 }
  0x20   : > { %v527_v44 = vsel %vm475_vm0, %v525_v38, 0.0  ;;  %v542_v46 = vand.u32 2147483647, %v540_v39  ;;  %v504_v47 = vsel %vm475_vm0, %v502_v40, 0.0 }
  0x21   : > { %596 = vrot.lane.b32.xlu1 %v1052_v19, %s965_s18  ;;  %570 = vrot.lane.b32.xlu0 %v1052_v19, %s966_s19  ;;  %v477_v37 = vsel %vm475_vm0, %v474_v30, 0.0  ;;  %v505_v48 = vsel %vm475_vm0, %v503_v41, 0.0  ;;  %v528_v49 = vadd.f32 %v527_v44, %v526_v43 }
  0x22   : > { %v478_v42 = vadd.f32 %v477_v37, %v476_v36  ;;  %v506_v50 = vadd.f32 %v505_v48, %v504_v47  ;;  %v544_v52 = vsel %vm475_vm0, %v542_v46, 0.0 }
  0x23   : > { %v545_v53 = vadd.f32 %v544_v52, %v543_v51 }
  0x40   : > { %479 = vadd.xlane.f32.xlu0 %v478_v42 }
  0x44   : > { %529 = vadd.xlane.f32.xlu0 %v528_v49 }
  0x45   : > { %507 = vadd.xlane.f32.xlu1 %v506_v50 }
  0x48   : > { %546 = vadd.xlane.f32.xlu0 %v545_v53 }
  0x8f   : > { %v595_v56 = vpop.permute.xlu1 %594  ;;  %v569_v57 = vpop.permute.xlu0 %568 }
  0x93   : > { %v597_v60 = vpop.permute.xlu1 %596  ;;  %v571_v61 = vpop.permute.xlu0 %570 }
  0x94   : > { %v599_v62 = vsel %vm598_vm1, %v595_v56, %v597_v60  ;;  %v600_v63 = vsel %vm598_vm1, %v597_v60, %v595_v56  ;;  %v573_v1 = vsel %vm572_vm2, %v569_v57, %v571_v61  ;;  %v574_v2 = vsel %vm572_vm2, %v571_v61, %v569_v57 }
  0x95   : > { %v601_v3 = vsub.f32 %v1048_v18, %v599_v62  ;;  %v602_v4 = vsub.f32 %v1052_v19, %v600_v63  ;;  %v575_v5 = vsub.f32 %v1048_v18, %v573_v1  ;;  %v576_v0 = vsub.f32 %v1052_v19, %v574_v2 }
  0x97   : > { %v603_v6 = vand.u32 2147483647, %v601_v3  ;;  %v604_v7 = vand.u32 2147483647, %v602_v4  ;;  %v577_v8 = vand.u32 2147483647, %v575_v5 }
  0x98   : > { %v578_v9 = vand.u32 2147483647, %v576_v0 }
  0x99   : > { %v579_v10 = vsel %vm451_vm3, %v577_v8, 0.0  ;;  %v606_v11 = vsel %vm454_vm5, %v604_v7, 0.0  ;;  %v607_v12 = vsel %vm475_vm0, %v603_v6, 0.0 }
  0x9a   : > { %v580_v13 = vsel %vm452_vm4, %v578_v9, 0.0  ;;  %v581_v14 = vsel %vm475_vm0, %v579_v10, 0.0  ;;  %v608_v15 = vsel %vm475_vm0, %v606_v11, 0.0 }
  0x9b   : > { %v582_v16 = vsel %vm475_vm0, %v580_v13, 0.0  ;;  %v609_v17 = vadd.f32 %v608_v15, %v607_v12 }
  0x9c   : > { %v583_v18 = vadd.f32 %v582_v16, %v581_v14 }
  0x9d   : > { %610 = vadd.xlane.f32.xlu0 %v609_v17 }
  0x9e   : > { %584 = vadd.xlane.f32.xlu1 %v583_v18 }
  0xcd   : > { %v480_v19 = vpop.xlane.xlu0 %479 }
  0xce   : > { %v481_v20 = vrot.slane %v480_v19, 4 }
  0xd0   : > { %v482_v21 = vadd.f32 %v481_v20, %v480_v19 }
  0xd1   : > { %v530_v22 = vpop.xlane.xlu0 %529 }
  0xd2   : > { %v483_v23 = vrot.slane %v482_v21, 2  ;;  %v508_v24 = vpop.xlane.xlu1 %507  ;;  %v531_v25 = vrot.slane %v530_v22, 4 }
  0xd3   : > { %v509_v26 = vrot.slane %v508_v24, 4 }
  0xd4   : > { %v532_v27 = vadd.f32 %v531_v25, %v530_v22  ;;  %v484_v28 = vadd.f32 %v483_v23, %v482_v21 }
  0xd5   : > { %v510_v29 = vadd.f32 %v509_v26, %v508_v24  ;;  %v547_v30 = vpop.xlane.xlu0 %546 }
  0xd6   : > { %v533_v31 = vrot.slane %v532_v27, 2  ;;  %v548_v32 = vrot.slane %v547_v30, 4  ;;  %v485_v33 = vrot.slane %v484_v28, 1 }
  0xd7   : > { %v511_v34 = vrot.slane %v510_v29, 2 }
  0xd8   : > { %v549_v35 = vadd.f32 %v548_v32, %v547_v30  ;;  %v486_v36 = vadd.f32 %v485_v33, %v484_v28  ;;  %v534_v37 = vadd.f32 %v533_v31, %v532_v27 }
  0xd9   : > { %v512_v38 = vadd.f32 %v511_v34, %v510_v29 }
  0xda   : > { %v550_v39 = vrot.slane %v549_v35, 2  ;;  %832 = vpush %v486_v36  ;;  %v535_v40 = vrot.slane %v534_v37, 1 }
  0xdb   : > { %v513_v41 = vrot.slane %v512_v38, 1 }
  0xdc   : > { %v536_v42 = vadd.f32 %v535_v40, %v534_v37  ;;  %v551_v43 = vadd.f32 %v550_v39, %v549_v35 }
  0xdd   : > { %v514_v44 = vadd.f32 %v513_v41, %v512_v38 }
  0xde   : > { %v552_v45 = vrot.slane %v551_v43, 1 }
  0xdf   : > { %834 = vpush %v514_v44 }
  0xe0   : > { %836 = vpush %v536_v42  ;;  %v553_v46 = vadd.f32 %v552_v45, %v551_v43 }
  0xe2   : > { %838 = vpush %v553_v46 }
 0x10b   : > { %s833_s24 = spop %832 }
 0x110   : > { %s835_s10 = spop %834 }
 0x111   : > { %s837_s12 = spop %836 }
 0x112   : > { %s538_s13 = sadd.f32 %s837_s12, %s833_s24 }
 0x113   : > { %s839_s14 = spop %838 }
 0x114   : > { %s621_s15 = smul.f32 0.0006510417, %s538_s13  ;;  %s555_s16 = sadd.f32 %s839_s14, %s835_s10 }
 0x116   : > { %s622_s17 = sadd.f32 %s621_s15, %s620_s9  ;;  %s626_s18 = smul.f32 0.0006510417, %s555_s16 }
 0x118   : > { %s627_s20 = sadd.f32 %s626_s18, %s625_s11 }
 0x119   : > { %624 = sst [smem:[#allocation2]] %s622_s17 }
 0x11a   : > { %629 = sst [smem:[#allocation4]] %s627_s20 }
 0x11b   : > { %908 = shalt.err (!%p905_p11)
}
 0x11c   : > { %s968_s24 = smov [#allocation4]   ;;  %s909_s13 = scalar_lea.hbm %s1158_s5, 16 }
 0x11d   : > { %850 = dma.smem_to_hbm (%p1084_p6), %s968_s24, 16, %s1159_s6, [#allocation5]  }
 0x11e   : > { %p910_p12 = scmp.ne.s32.totalorder %s1158_s5, %s909_s13  ;;  %p915_p1 = scmp.lt.u32.totalorder %s909_s13, %s1158_s5 }
 0x120   : > { %p911_p13 = pnand %p910_p12, %p1084_p6 }
 0x122   : > { %p912_p0 = pneg %p911_p13 }
 0x124   : > { %p917_p2 = pnand %p915_p1, %p912_p0 }
 0x126   : > { %920 = shalt.err (!%p917_p2)
}
 0x127   : > { %s969_s18 = smov [#allocation2]   ;;  %s630_s22 = sld [smem:[#allocation6]] }
 0x128   : > { %848 = dma.smem_to_hbm (%p1084_p6), %s969_s18, 16, %s1158_s5, [#allocation3]  }
 0x129   : > { %s921_s11 = scalar_lea.hbm %s1160_s7, 16 }
 0x12a   : > { %v611_v47 = vpop.xlane.xlu0 %610  ;;  %p922_p3 = scmp.ne.s32.totalorder %s1160_s7, %s921_s11  ;;  %p927_p7 = scmp.lt.u32.totalorder %s921_s11, %s1160_s7 }
 0x12b   : > { %v585_v48 = vpop.xlane.xlu1 %584  ;;  %v612_v49 = vrot.slane %v611_v47, 4 }
 0x12c   : > { %v586_v50 = vrot.slane %v585_v48, 4  ;;  %p923_p4 = pnand %p922_p3, %p1084_p6 }
 0x12d   : > { %v613_v51 = vadd.f32 %v612_v49, %v611_v47 }
 0x12e   : > { %v587_v52 = vadd.f32 %v586_v50, %v585_v48  ;;  %p924_p5 = pneg %p923_p4 }
 0x12f   : > { %v614_v53 = vrot.slane %v613_v51, 2 }
 0x130   : > { %v588_v54 = vrot.slane %v587_v52, 2  ;;  %p929_p8 = pnand %p927_p7, %p924_p5 }
 0x131   : > { %v615_v55 = vadd.f32 %v614_v53, %v613_v51 }
 0x132   : > { %v589_v56 = vadd.f32 %v588_v54, %v587_v52 }
 0x133   : > { %v616_v57 = vrot.slane %v615_v55, 1 }
 0x134   : > { %v590_v58 = vrot.slane %v589_v56, 1 }
 0x135   : > { %v617_v59 = vadd.f32 %v616_v57, %v615_v55 }
 0x136   : > { %v591_v60 = vadd.f32 %v590_v58, %v589_v56 }
 0x138   : > { %840 = vpush %v591_v60 }
 0x139   : > { %842 = vpush %v617_v59 }
 0x169   : > { %s841_s23 = spop %840 }
 0x16a   : > { %s631_s29 = smul.f32 0.00069444446, %s841_s23  ;;  %s843_s30 = spop %842 }
 0x16b   : > { %s632_s8 = smul.f32 0.00069444446, %s843_s30 }
 0x16d   : > { %s633_s27 = sadd.f32 %s632_s8, %s631_s29 }
 0x16f   : > { %s634_s24 = sadd.f32 %s633_s27, %s630_s22 }
 0x171   : > { %636 = sst [smem:[#allocation6]] %s634_s24 }
 0x172   : > { %932 = shalt.err (!%p929_p8)
}
 0x173   : > { %s970_s16 = smov [#allocation6]  }
 0x174   : > { %852 = dma.smem_to_hbm (%p1084_p6), %s970_s16, 16, %s1160_s7, [#allocation5]  }
 0x175   : > { %946 = dma.done.wait (%p1084_p6), [#allocation3], 16  }
 0x176   : > { %948 = vsyncadd (%p1084_p6), [#allocation3], 4294967280 }
 0x177   : > { %950 = dma.done.wait (%p1084_p6), [#allocation5], 32  }
 0x178   : > { %952 = vsyncadd (%p1084_p6), [#allocation5], 4294967264 }
 0x179   : > { %676 = sfence }
 0x17a PF: > { %s20_s26 = sadd.s32 1, %s963_s26   ;;  %s1162_s24 = smov %s959_s25 }
 0x17b   : > { %p17_p9 = scmp.ge.s32.totalorder %s20_s26, 4   ;;  %s1163_s25 = smov %s1165_s28 }
 0x17d   :  { %19 = sbr.rel (!%p17_p9) target bundleno = 3 (0x3), region = 105 }
 0x184   :  { %682 = vsyncpa [#allocation3], 1 }
 0x185   :  { %684 = vsyncpa [#allocation3 + $0x1], 1 }
 0x186   :  { %685 = vsyncpa [#allocation5], 1 }

// kernel: _inpainting_loss_impl.7
= control target key start
LH: loop header
LB: loop body
LE: loop exit
PB: predicated region body
PF: predicated region fallthrough
CT: control target
= control target key end

     0   :  { %10 = vsyncpa [#allocation6], 0  ;;  %s1372_s0 = inlined_call_operand.vmem [shape: f32[2,32,16], index: 0, kind: input, shape index: {}]   ;;  %s1373_s1 = inlined_call_operand.vmem [shape: f32[2,32,16], index: 1, kind: input, shape index: {}]   ;;  %s1374_s2 = inlined_call_operand.vmem [shape: f32[2,32,16], index: 2, kind: input, shape index: {}]   ;;  %s1375_s3 = inlined_call_operand.hbm [shape: f32[1,1], index: 3, kind: output, shape index: {0}]   ;;  %s1376_s4 = inlined_call_operand.hbm [shape: f32[1,1], index: 4, kind: output, shape index: {1}]  }
   0x1   :  { %11 = vsyncpa [#allocation8], 0  ;;  %s1174_s15 = smov 0   ;;  %s1176_s16 = smov 0  }
   0x2   :  { %s1178_s17 = smov 0  }
   0x3 LB: > { %s888_s18 = sadd.s32 4294967295, %s1143_s17   ;;  %s29_s19 = sadd.s32 1, %s1139_s16  ;;  %s1143_s17 = sphi %s1178_s17, %s17_s17   ;;  %s1139_s16 = sphi %s1176_s16, %s1381_s16   ;;  %s1135_s15 = sphi %s1174_s15, %s1380_s15  }
   0x4   : > { %p31_p0 = scmp.ge.s32.totalorder %s29_s19, 2  ;;  %p891_p1 = scmp.ge.s32.totalorder %s1143_s17, 1 }
   0x5   : > { %p204_p2 = scmp.lt.s32.totalorder %s1143_s17, 3 }
   0x6   : > { %s1383_s19 = smov (%p31_p0, %s29_s19), 0 }
   0x7   : > { %p205_p3 = pnand %p891_p1, %p204_p2 }
   0x8   : > { %p244_p4 = scmp.lt.s32.totalorder (!%p205_p3), %s1135_s15, 1  ;;  %vm281_vm0 = vcmask (!%p205_p3), 261120   ;;  %v1145_v0 = vmov (!%p205_p3), 0.0   ;;  %vm302_vm1 = vcmask (!%p205_p3), 130048   ;;  %p268_p5 = scmp.eq.s32.totalorder (!%p205_p3), %s1135_s15, 0 }
   0x9   : > { %208 = sbr.rel (%p205_p3) target bundleno = 510 (0x1fe), region = 32  ;;  %283 = vst.msk [vmem:[#allocation2 + $0x8] sm:$0xff] (!%p205_p3), %vm281_vm0, %v1145_v0  ;;  %282 = vst.msk [vmem:[#allocation2] sm:$0xff] (!%p205_p3), %vm281_vm0, %v1145_v0  ;;  %s1146_s5 = smov (!%p205_p3), 0.0  }
   0xa   : > { %284 = vst.msk [vmem:[#allocation2 + $0x10] sm:$0xff] (!%p205_p3), %vm281_vm0, %v1145_v0  ;;  %285 = vst.msk [vmem:[#allocation2 + $0x18] sm:$0xff] (!%p205_p3), %vm281_vm0, %v1145_v0  ;;  %p1319_p6 = scmp.eq.s32.totalorder (!%p205_p3), %s888_s18, 1 }
   0xb   : > { %286 = vst.msk [vmem:[#allocation3] sm:$0xff] (!%p205_p3), %vm281_vm0, %v1145_v0  ;;  %287 = vst.msk [vmem:[#allocation3 + $0x8] sm:$0xff] (!%p205_p3), %vm281_vm0, %v1145_v0 }
   0xc   : > { %288 = vst.msk [vmem:[#allocation3 + $0x10] sm:$0xff] (!%p205_p3), %vm281_vm0, %v1145_v0  ;;  %289 = vst.msk [vmem:[#allocation3 + $0x18] sm:$0xff] (!%p205_p3), %vm281_vm0, %v1145_v0 }
   0xd   : > { %290 = vst.msk [vmem:[#allocation4] sm:$0xff] (!%p205_p3), %vm281_vm0, %v1145_v0  ;;  %291 = vst.msk [vmem:[#allocation4 + $0x8] sm:$0xff] (!%p205_p3), %vm281_vm0, %v1145_v0 }
   0xe   : > { %292 = vst.msk [vmem:[#allocation4 + $0x10] sm:$0xff] (!%p205_p3), %vm281_vm0, %v1145_v0  ;;  %293 = vst.msk [vmem:[#allocation4 + $0x18] sm:$0xff] (!%p205_p3), %vm281_vm0, %v1145_v0 }
   0xf   : > { %vm1216_vm2 = vmpackc.low (!%p205_p3), %vm302_vm1, %vm302_vm1 }
  0x10   : > { %s245_s20 = scalar_select %p244_p4, %s1135_s15, 1  ;;  %v299_v50 = vld [vmem:[#allocation2 + $0x8] sm:$0xff]  ;;  %v298_v52 = vld [vmem:[#allocation2] sm:$0xff] }
  0x11   : > { %v301_v61 = vld [vmem:[#allocation2 + $0x18] sm:$0xff]  ;;  %v300_v0 = vld [vmem:[#allocation2 + $0x10] sm:$0xff]  ;;  %1047 = sst [smem:[#allocation5]] (%p268_p5), %s1146_s5  ;;  %s1089_s15 = scalar_lea.hbm %s1375_s3, 16 }
  0x12   : > { %s929_s21 = sshll.u32 %s245_s20, 5  ;;  %v468_v51 = vld [vmem:[#allocation3 + $0x8] sm:$0xff]  ;;  %v467_v54 = vld [vmem:[#allocation3] sm:$0xff]  ;;  %1048 = sst [smem:[#allocation7]] (%p268_p5), %s1146_s5 }
  0x13   : > { %s251_s24 = scalar_lea.vmem %s1372_s0, %s929_s21  ;;  %s259_s27 = scalar_lea.vmem %s1373_s1, %s929_s21  ;;  %v470_v63 = vld [vmem:[#allocation3 + $0x18] sm:$0xff] }
  0x14   : > { %v1223_v2 = vld [vmem:[%s251_s24] sm:$0xff]  ;;  %v1225_v3 = vld [vmem:[%s251_s24 + $0x8] sm:$0xff]  ;;  %v296_v7 = vld [vmem:[%s251_s24 + $0x10] sm:$0xff]  ;;  %s267_s30 = scalar_lea.vmem %s1374_s2, %s929_s21  ;;  %s685_s6 = sld [smem:[#allocation5]] }
  0x15   : > { %v409_v4 = vld [vmem:[%s259_s27] sm:$0xff]  ;;  %v999_v5 = vpack.c.bf16 %v1225_v3, %v1223_v2  ;;  %v410_v6 = vld [vmem:[%s259_s27 + $0x8] sm:$0xff]  ;;  %v1229_v8 = vld [vmem:[%s251_s24 + $0x18] sm:$0xff]  ;;  %965 = vmatprep.mubr.msk.f32.mxu0 %vm302_vm1, %v1223_v2  ;;  %p1090_p7 = scmp.ne.s32.totalorder %s1375_s3, %s1089_s15  ;;  %p1095_p10 = scmp.lt.u32.totalorder %s1089_s15, %s1375_s3 }
  0x16   : > { %979 = vmatprep.mubr.msk.f32.mxu1 %vm302_vm1, %v409_v4  ;;  %v1011_v9 = vpack.c.bf16 %v410_v6, %v409_v4  ;;  %v1005_v10 = vpack.c.bf16 %v1229_v8, %v296_v7  ;;  %v411_v11 = vld [vmem:[%s259_s27 + $0x10] sm:$0xff]  ;;  %v412_v12 = vld [vmem:[%s259_s27 + $0x18] sm:$0xff]  ;;  %v413_v14 = vld [vmem:[%s267_s30] sm:$0xff]  ;;  %v417_v20 = vsub.f32 %v409_v4, %v1223_v2  ;;  %v418_v21 = vsub.f32 %v410_v6, %v1225_v3 }
  0x17   : > { %1001 = vmatprep.subr.msk.bf16.mxu0 %vm1216_vm2, %v999_v5  ;;  %v1017_v13 = vpack.c.bf16 %v412_v12, %v411_v11  ;;  %v414_v15 = vld [vmem:[%s267_s30 + $0x8] sm:$0xff]  ;;  %v415_v17 = vld [vmem:[%s267_s30 + $0x10] sm:$0xff]  ;;  %v416_v18 = vld [vmem:[%s267_s30 + $0x18] sm:$0xff]  ;;  %v419_v24 = vsub.f32 %v411_v11, %v296_v7  ;;  %v420_v25 = vsub.f32 %v412_v12, %v1229_v8  ;;  %v442_v30 = vsub.f32 %v413_v14, %v1223_v2  ;;  %p1091_p8 = pnand %p1090_p7, %p1319_p6 }
  0x18   : > { %1013 = vmatprep.subr.msk.bf16.mxu1 %vm1216_vm2, %v1011_v9  ;;  %1004 = vmatpush3.bf16.xpose.msk.msra.mxu0 %vm1216_vm2, %v999_v5  ;;  %v1023_v16 = vpack.c.bf16 %v414_v15, %v413_v14  ;;  %v1029_v19 = vpack.c.bf16 %v416_v18, %v415_v17  ;;  %v421_v22 = vand.u32 2147483647, %v417_v20  ;;  %v422_v23 = vand.u32 2147483647, %v418_v21  ;;  %v469_v2 = vld [vmem:[#allocation3 + $0x10] sm:$0xff]  ;;  %v576_v20 = vld [vmem:[#allocation4] sm:$0xff] }
  0x19   : > { %1016 = vmatpush3.bf16.xpose.msk.msra.mxu1 %vm1216_vm2, %v1011_v9  ;;  %1007 = vmatprep.subr.msk.bf16.mxu0 %vm1216_vm2, %v1005_v10  ;;  %v423_v26 = vand.u32 2147483647, %v419_v24  ;;  %v443_v31 = vsub.f32 %v414_v15, %v1225_v3  ;;  %v424_v32 = vand.u32 2147483647, %v420_v25  ;;  %v444_v34 = vsub.f32 %v415_v17, %v296_v7  ;;  %p1092_p9 = pneg %p1091_p8 }
  0x1a   : > { %1019 = vmatprep.subr.msk.bf16.mxu1 %vm1216_vm2, %v1017_v13  ;;  %v425_v27 = vsel %vm302_vm1, %v421_v22, 0.0  ;;  %v426_v28 = vsel %vm302_vm1, %v422_v23, 0.0  ;;  %v446_v36 = vand.u32 2147483647, %v442_v30  ;;  %v445_v39 = vsub.f32 %v416_v18, %v1229_v8  ;;  %v578_v23 = vld [vmem:[#allocation4 + $0x10] sm:$0xff] }
  0x1b   : > { %v427_v29 = vadd.f32 %v426_v28, %v425_v27  ;;  %v428_v33 = vsel %vm302_vm1, %v423_v26, 0.0  ;;  %v447_v37 = vand.u32 2147483647, %v443_v31  ;;  %v430_v38 = vsel %vm302_vm1, %v424_v32, 0.0  ;;  %p1097_p11 = pnand %p1095_p10, %p1092_p9 }
  0x1c   : > { %v448_v40 = vand.u32 2147483647, %v444_v34  ;;  %v450_v42 = vsel %vm302_vm1, %v446_v36, 0.0  ;;  %v449_v44 = vand.u32 2147483647, %v445_v39 }
  0x1d   : > { %v429_v35 = vadd.f32 %v428_v33, %v427_v29  ;;  %v451_v43 = vsel %vm302_vm1, %v447_v37, 0.0 }
  0x1e   : > { %v452_v45 = vadd.f32 %v451_v43, %v450_v42  ;;  %v453_v46 = vsel %vm302_vm1, %v448_v40, 0.0  ;;  %v455_v48 = vsel %vm302_vm1, %v449_v44, 0.0 }
  0x1f   : > { %v431_v41 = vadd.f32 %v430_v38, %v429_v35 }
  0x20   : > { %1010 = vmatpush3.bf16.xpose.msk.msra.mxu0 %vm1216_vm2, %v1005_v10  ;;  %v454_v47 = vadd.f32 %v453_v46, %v452_v45 }
  0x21   : > { %1022 = vmatpush3.bf16.xpose.msk.msra.mxu1 %vm1216_vm2, %v1017_v13  ;;  %1025 = vmatprep.subr.msk.bf16.mxu0 %vm1216_vm2, %v1023_v16 }
  0x22   : > { %1035 = vmatprep.subr.msk.bf16.mxu1 %vm1216_vm2, %v1023_v16  ;;  %432 = vadd.xlane.f32.xlu0 %v431_v41  ;;  %v456_v49 = vadd.f32 %v455_v48, %v454_v47 }
  0x26   : > { %457 = vadd.xlane.f32.xlu0 %v456_v49 }
  0x27   : > { %966 = vmatmul.mubr.msk.f32.vlgmr.msra.gmra.mrb[0].mxu0 %vm302_vm1, %v1225_v3 }
  0x28   : > { %980 = vmatmul.mubr.msk.f32.vlgmr.msra.gmra.mrb[0].mxu1 %vm302_vm1, %v410_v6  ;;  %1028 = vmatpush3.bf16.xpose.msk.msra.mxu0 %vm1216_vm2, %v1023_v16 }
  0x29   : > { %1037 = vmatpush3.bf16.xpose.msk.msra.mxu1 %vm1216_vm2, %v1023_v16  ;;  %968 = vmatprep.mubr.msk.f32.mxu0 %vm302_vm1, %v296_v7 }
  0x2a   : > { %982 = vmatprep.mubr.msk.f32.mxu1 %vm302_vm1, %v411_v11  ;;  %1031 = vmatprep.subr.msk.bf16.mxu0 %vm1216_vm2, %v1029_v19 }
  0x2b   : > { %969 = vmatmul.mubr.msk.f32.gmra.mrb[2].mxu0 %vm302_vm1, %v1229_v8  ;;  %1036 = vmatprep.subr.msk.bf16.mxu1 %vm1216_vm2, %v1029_v19 }
  0x2c   : > { %983 = vmatmul.mubr.msk.f32.gmra.mrb[2].mxu1 %vm302_vm1, %v412_v12  ;;  %993 = vmatprep.mubr.msk.f32.mxu0 %vm302_vm1, %v413_v14 }
  0x2d   : > { %996 = vmatprep.mubr.msk.f32.mxu1 %vm302_vm1, %v415_v17  ;;  %v577_v17 = vld [vmem:[#allocation4 + $0x8] sm:$0xff] }
  0x30   : > { %1034 = vmatpush3.bf16.xpose.msk.msra.mxu0 %vm1216_vm2, %v1029_v19 }
  0x31   : > { %1038 = vmatpush3.bf16.xpose.msk.msra.mxu1 %vm1216_vm2, %v1029_v19  ;;  %v579_v19 = vld [vmem:[#allocation4 + $0x18] sm:$0xff] }
  0x37   : > { %994 = vmatmul.mubr.msk.f32.vlgmr.msra.gmra.mrb[4].mxu0 %vm302_vm1, %v414_v15 }
  0x38   : > { %997 = vmatmul.mubr.msk.f32.vlgmr.msra.gmra.mrb[4].mxu1 %vm302_vm1, %v416_v18 }
  0xfa   : > { %v967_v53 = vpop.f32.mrb[0].mxu0 }
  0xfb   : > { %v401_v55 = vadd.f32 %v967_v53, %v299_v50  ;;  %v981_v56 = vpop.f32.mrb[0].mxu1  ;;  %v381_v57 = vpop.f32.mrb[1].mxu0 }
  0xfc   : > { %v569_v58 = vadd.f32 %v981_v56, %v468_v51  ;;  %v400_v59 = vadd.f32 %v381_v57, %v298_v52  ;;  %v549_v60 = vpop.f32.mrb[1].mxu1 }
  0xfd   : > { %406 = vst.msk [vmem:[#allocation2 + $0x8] sm:$0xff] %vm281_vm0, %v401_v55  ;;  %v568_v62 = vadd.f32 %v549_v60, %v467_v54 }
  0xfe   : > { %573 = vst.msk [vmem:[#allocation3 + $0x8] sm:$0xff] %vm281_vm0, %v569_v58  ;;  %405 = vst.msk [vmem:[#allocation2] sm:$0xff] %vm281_vm0, %v400_v59  ;;  %v970_v1 = vpop.f32.mrb[2].mxu0 }
  0xff   : > { %572 = vst.msk [vmem:[#allocation3] sm:$0xff] %vm281_vm0, %v568_v62  ;;  %v403_v3 = vadd.f32 %v970_v1, %v301_v61  ;;  %v984_v4 = vpop.f32.mrb[2].mxu1  ;;  %v391_v5 = vpop.f32.mrb[3].mxu0 }
 0x100   : > { %v571_v6 = vadd.f32 %v984_v4, %v470_v63  ;;  %v402_v7 = vadd.f32 %v391_v5, %v300_v0  ;;  %v559_v8 = vpop.f32.mrb[3].mxu1 }
 0x101   : > { %408 = vst.msk [vmem:[#allocation2 + $0x18] sm:$0xff] %vm281_vm0, %v403_v3  ;;  %v570_v9 = vadd.f32 %v559_v8, %v469_v2 }
 0x102   : > { %575 = vst.msk [vmem:[#allocation3 + $0x18] sm:$0xff] %vm281_vm0, %v571_v6  ;;  %407 = vst.msk [vmem:[#allocation2 + $0x10] sm:$0xff] %vm281_vm0, %v402_v7 }
 0x103   : > { %574 = vst.msk [vmem:[#allocation3 + $0x10] sm:$0xff] %vm281_vm0, %v570_v9 }
 0x104   : > { %v694_v10 = vld [vmem:[#allocation2 + $0x8] sm:$0xff] }
 0x105   : > { %v693_v11 = vld [vmem:[#allocation2] sm:$0xff]  ;;  %v698_v12 = vmul.f32 0.001953125, %v694_v10  ;;  %v702_v13 = vld [vmem:[#allocation3 + $0x8] sm:$0xff]  ;;  %v433_v10 = vpop.xlane.xlu0 %432 }
 0x106   : > { %v697_v14 = vmul.f32 0.001953125, %v693_v11  ;;  %v701_v15 = vld [vmem:[#allocation3] sm:$0xff]  ;;  %v706_v16 = vmul.f32 0.001953125, %v702_v13  ;;  %v434_v13 = vrot.slane %v433_v10, 4 }
 0x107   : > { %v705_v18 = vmul.f32 0.001953125, %v701_v15 }
 0x108   : > { %v696_v21 = vld [vmem:[#allocation2 + $0x18] sm:$0xff]  ;;  %v718_v22 = vsub.f32 %v706_v16, %v698_v12 }
 0x109   : > { %v695_v24 = vld [vmem:[#allocation2 + $0x10] sm:$0xff]  ;;  %v700_v25 = vmul.f32 0.001953125, %v696_v21  ;;  %v704_v26 = vld [vmem:[#allocation3 + $0x18] sm:$0xff]  ;;  %v717_v27 = vsub.f32 %v705_v18, %v697_v14  ;;  %v458_v16 = vpop.xlane.xlu0 %457 }
 0x10a   : > { %v995_v28 = vpop.f32.mrb[4].mxu0  ;;  %v699_v29 = vmul.f32 0.001953125, %v695_v24  ;;  %v703_v30 = vld [vmem:[#allocation3 + $0x10] sm:$0xff]  ;;  %v708_v31 = vmul.f32 0.001953125, %v704_v26  ;;  %v722_v32 = vand.u32 2147483647, %v718_v22 }
 0x10b   : > { %v678_v33 = vadd.f32 %v995_v28, %v577_v17  ;;  %v998_v34 = vpop.f32.mrb[4].mxu1  ;;  %v658_v35 = vpop.f32.mrb[5].mxu0  ;;  %v707_v36 = vmul.f32 0.001953125, %v703_v30  ;;  %v721_v37 = vand.u32 2147483647, %v717_v27  ;;  %v459_v17 = vrot.slane %v458_v16, 4 }
 0x10c   : > { %v680_v38 = vadd.f32 %v998_v34, %v579_v19  ;;  %v677_v39 = vadd.f32 %v658_v35, %v576_v20  ;;  %v668_v40 = vpop.f32.mrb[5].mxu1  ;;  %v720_v41 = vsub.f32 %v708_v31, %v700_v25  ;;  %v726_v45 = vsel %vm281_vm0, %v722_v32, 0.0 }
 0x10d   : > { %682 = vst.msk [vmem:[#allocation4 + $0x8] sm:$0xff] %vm281_vm0, %v678_v33  ;;  %v679_v42 = vadd.f32 %v668_v40, %v578_v23  ;;  %v719_v43 = vsub.f32 %v707_v36, %v699_v29  ;;  %v725_v44 = vsel %vm281_vm0, %v721_v37, 0.0  ;;  %v460_v18 = vadd.f32 %v459_v17, %v458_v16 }
 0x10e   : > { %684 = vst.msk [vmem:[#allocation4 + $0x18] sm:$0xff] %vm281_vm0, %v680_v38  ;;  %681 = vst.msk [vmem:[#allocation4] sm:$0xff] %vm281_vm0, %v677_v39  ;;  %v724_v46 = vand.u32 2147483647, %v720_v41  ;;  %v727_v48 = vadd.f32 %v726_v45, %v725_v44 }
 0x10f   : > { %683 = vst.msk [vmem:[#allocation4 + $0x10] sm:$0xff] %vm281_vm0, %v679_v42  ;;  %v723_v47 = vand.u32 2147483647, %v719_v43  ;;  %v461_v20 = vrot.slane %v460_v18, 2 }
 0x110   : > { %v730_v50 = vsel %vm281_vm0, %v724_v46, 0.0 }
 0x111   : > { %v728_v49 = vsel %vm281_vm0, %v723_v47, 0.0  ;;  %v462_v22 = vadd.f32 %v461_v20, %v460_v18 }
 0x112   : > { %v729_v51 = vadd.f32 %v728_v49, %v727_v48 }
 0x113   : > { %v463_v24 = vrot.slane %v462_v22, 1 }
 0x114   : > { %v731_v52 = vadd.f32 %v730_v50, %v729_v51  ;;  %v710_v53 = vld [vmem:[#allocation4 + $0x8] sm:$0xff] }
 0x115   : > { %v709_v54 = vld [vmem:[#allocation4] sm:$0xff]  ;;  %v712_v55 = vld [vmem:[#allocation4 + $0x18] sm:$0xff]  ;;  %v714_v56 = vmul.f32 0.001953125, %v710_v53 }
 0x116   : > { %732 = vadd.xlane.f32.xlu1 %v731_v52  ;;  %v711_v57 = vld [vmem:[#allocation4 + $0x10] sm:$0xff]  ;;  %v713_v58 = vmul.f32 0.001953125, %v709_v54  ;;  %v716_v59 = vmul.f32 0.001953125, %v712_v55 }
 0x117   : > { %v715_v60 = vmul.f32 0.001953125, %v711_v57  ;;  %v743_v61 = vsub.f32 %v714_v56, %v698_v12 }
 0x118   : > { %v742_v62 = vsub.f32 %v713_v58, %v697_v14  ;;  %v745_v63 = vsub.f32 %v716_v59, %v700_v25  ;;  %v435_v14 = vadd.f32 %v434_v13, %v433_v10  ;;  %v464_v25 = vadd.f32 %v463_v24, %v462_v22 }
 0x119   : > { %v744_v0 = vsub.f32 %v715_v60, %v699_v29  ;;  %v747_v1 = vand.u32 2147483647, %v743_v61 }
 0x11a   : > { %v746_v2 = vand.u32 2147483647, %v742_v62  ;;  %v749_v5 = vand.u32 2147483647, %v745_v63  ;;  %v436_v15 = vrot.slane %v435_v14, 2 }
 0x11b   : > { %v748_v3 = vand.u32 2147483647, %v744_v0  ;;  %v751_v4 = vsel %vm281_vm0, %v747_v1, 0.0 }
 0x11c   : > { %v750_v6 = vsel %vm281_vm0, %v746_v2, 0.0  ;;  %v755_v11 = vsel %vm281_vm0, %v749_v5, 0.0  ;;  %v437_v19 = vadd.f32 %v436_v15, %v435_v14 }
 0x11d   : > { %v752_v7 = vadd.f32 %v751_v4, %v750_v6  ;;  %v753_v8 = vsel %vm281_vm0, %v748_v3, 0.0 }
 0x11e   : > { %v438_v21 = vrot.slane %v437_v19, 1 }
 0x11f   : > { %v754_v9 = vadd.f32 %v753_v8, %v752_v7 }
 0x120   : > { %v439_v23 = vadd.f32 %v438_v21, %v437_v19 }
 0x121   : > { %v756_v12 = vadd.f32 %v755_v11, %v754_v9 }
 0x122   : > { %1039 = vpush %v439_v23 }
 0x123   : > { %757 = vadd.xlane.f32.xlu1 %v756_v12  ;;  %1041 = vpush %v464_v25 }
 0x153   : > { %s1040_s7 = spop %1039 }
 0x154   : > { %s1042_s8 = spop %1041 }
 0x155   : > { %s466_s9 = sadd.f32 %s1042_s8, %s1040_s7 }
 0x157   : > { %s686_s10 = smul.f32 0.0009765625, %s466_s9 }
 0x159   : > { %s687_s11 = sadd.f32 %s686_s10, %s685_s6 }
 0x15b   : > { %689 = sst [smem:[#allocation5]] %s687_s11 }
 0x15c   : > { %1100 = shalt.err (!%p1097_p11)
}
 0x15d   : > { %s1147_s18 = smov [#allocation5]   ;;  %s767_s26 = sld [smem:[#allocation7]] }
 0x15e   : > { %1050 = dma.smem_to_hbm (%p1319_p6), %s1147_s18, 16, %s1375_s3, [#allocation6]  }
 0x15f   : > { %s1101_s8 = scalar_lea.hbm %s1376_s4, 16 }
 0x160   : > { %p1102_p12 = scmp.ne.s32.totalorder %s1376_s4, %s1101_s8  ;;  %p1107_p1 = scmp.lt.u32.totalorder %s1101_s8, %s1376_s4 }
 0x162   : > { %p1103_p13 = pnand %p1102_p12, %p1319_p6 }
 0x164   : > { %p1104_p0 = pneg %p1103_p13 }
 0x166   : > { %p1109_p2 = pnand %p1107_p1, %p1104_p0 }
 0x1a3   : > { %v733_v26 = vpop.xlane.xlu1 %732 }
 0x1a4   : > { %v734_v27 = vrot.slane %v733_v26, 4 }
 0x1a6   : > { %v735_v28 = vadd.f32 %v734_v27, %v733_v26 }
 0x1a8   : > { %v736_v29 = vrot.slane %v735_v28, 2 }
 0x1aa   : > { %v737_v30 = vadd.f32 %v736_v29, %v735_v28 }
 0x1ac   : > { %v738_v31 = vrot.slane %v737_v30, 1 }
 0x1ae   : > { %v739_v32 = vadd.f32 %v738_v31, %v737_v30 }
 0x1b0   : > { %1043 = vpush %v739_v32  ;;  %v758_v33 = vpop.xlane.xlu1 %757 }
 0x1b1   : > { %v759_v34 = vrot.slane %v758_v33, 4 }
 0x1b3   : > { %v760_v35 = vadd.f32 %v759_v34, %v758_v33 }
 0x1b5   : > { %v761_v36 = vrot.slane %v760_v35, 2 }
 0x1b7   : > { %v762_v37 = vadd.f32 %v761_v36, %v760_v35 }
 0x1b9   : > { %v763_v38 = vrot.slane %v762_v37, 1 }
 0x1bb   : > { %v764_v39 = vadd.f32 %v763_v38, %v762_v37 }
 0x1bd   : > { %1045 = vpush %v764_v39 }
 0x1e1   : > { %s1044_s27 = spop %1043 }
 0x1ee   : > { %s1046_s28 = spop %1045 }
 0x1ef   : > { %s766_s29 = sadd.f32 %s1046_s28, %s1044_s27 }
 0x1f1   : > { %s768_s30 = smul.f32 0.00048828125, %s766_s29 }
 0x1f3   : > { %s769_s5 = sadd.f32 %s768_s30, %s767_s26 }
 0x1f5   : > { %771 = sst [smem:[#allocation7]] %s769_s5 }
 0x1f6   : > { %1112 = shalt.err (!%p1109_p2)
}
 0x1f7   : > { %s1148_s14 = smov [#allocation7]  }
 0x1f8   : > { %1052 = dma.smem_to_hbm (%p1319_p6), %s1148_s14, 16, %s1376_s4, [#allocation8]  }
 0x1f9   : > { %1126 = dma.done.wait (%p1319_p6), [#allocation6], 16  }
 0x1fa   : > { %1128 = vsyncadd (%p1319_p6), [#allocation6], 4294967280 }
 0x1fb   : > { %1130 = dma.done.wait (%p1319_p6), [#allocation8], 16  }
 0x1fc   : > { %1132 = vsyncadd (%p1319_p6), [#allocation8], 4294967280 }
 0x1fd   : > { %798 = sfence }
 0x1fe PF: > { %s17_s17 = sadd.s32 1, %s1143_s17   ;;  %s1380_s15 = smov %s1139_s16 }
 0x1ff   : > { %p14_p3 = scmp.ge.s32.totalorder %s17_s17, 4   ;;  %s1381_s16 = smov %s1383_s19 }
 0x201   :  { %16 = sbr.rel (!%p14_p3) target bundleno = 3 (0x3), region = 89 }
 0x208   :  { %804 = vsyncpa [#allocation6], 1 }
 0x209   :  { %806 = vsyncpa [#allocation6 + $0x1], 1 }
 0x20a   :  { %807 = vsyncpa [#allocation8], 1 }

// kernel: _inpainting_loss_impl.6
= control target key start
LH: loop header
LB: loop body
LE: loop exit
PB: predicated region body
PF: predicated region fallthrough
CT: control target
= control target key end

     0   :  { %10 = vsyncpa [#allocation6], 0  ;;  %s1117_s0 = inlined_call_operand.vmem [shape: f32[2,16,64], index: 0, kind: input, shape index: {}]   ;;  %s1118_s1 = inlined_call_operand.vmem [shape: f32[2,16,64], index: 1, kind: input, shape index: {}]   ;;  %s1119_s2 = inlined_call_operand.vmem [shape: f32[2,16,64], index: 2, kind: input, shape index: {}]   ;;  %s1120_s3 = inlined_call_operand.hbm [shape: f32[1,1], index: 3, kind: output, shape index: {0}]   ;;  %s1121_s4 = inlined_call_operand.hbm [shape: f32[1,1], index: 4, kind: output, shape index: {1}]  }
   0x1   :  { %11 = vsyncpa [#allocation8], 0  ;;  %s985_s15 = smov 0   ;;  %s987_s16 = smov 0  }
   0x2   :  { %s989_s17 = smov 0  }
   0x3 LB: > { %s766_s18 = sadd.s32 4294967295, %s954_s17   ;;  %s29_s19 = sadd.s32 1, %s950_s16  ;;  %s954_s17 = sphi %s989_s17, %s17_s17   ;;  %s950_s16 = sphi %s987_s16, %s1126_s16   ;;  %s946_s15 = sphi %s985_s15, %s1125_s15  }
   0x4   : > { %p31_p0 = scmp.ge.s32.totalorder %s29_s19, 2  ;;  %p769_p1 = scmp.ge.s32.totalorder %s954_s17, 1 }
   0x5   : > { %p204_p2 = scmp.lt.s32.totalorder %s954_s17, 3 }
   0x6   : > { %s1128_s19 = smov (%p31_p0, %s29_s19), 0 }
   0x7   : > { %p205_p3 = pnand %p769_p1, %p204_p2 }
   0x8   : > { %p244_p4 = scmp.lt.s32.totalorder (!%p205_p3), %s946_s15, 1  ;;  %vm281_vm0 = vcmask (!%p205_p3), 130048   ;;  %v956_v0 = vmov (!%p205_p3), 0.0   ;;  %vm292_vm1 = vcmask (!%p205_p3), 523264   ;;  %p268_p5 = scmp.eq.s32.totalorder (!%p205_p3), %s946_s15, 0 }
   0x9   : > { %208 = sbr.rel (%p205_p3) target bundleno = 490 (0x1ea), region = 32  ;;  %283 = vst.msk [vmem:[#allocation2 + $0x8] sm:$0xff] (!%p205_p3), %vm281_vm0, %v956_v0  ;;  %282 = vst.msk [vmem:[#allocation2] sm:$0xff] (!%p205_p3), %vm281_vm0, %v956_v0  ;;  %s957_s5 = smov (!%p205_p3), 0.0  }
   0xa   : > { %284 = vst.msk [vmem:[#allocation3] sm:$0xff] (!%p205_p3), %vm281_vm0, %v956_v0  ;;  %285 = vst.msk [vmem:[#allocation3 + $0x8] sm:$0xff] (!%p205_p3), %vm281_vm0, %v956_v0  ;;  %p1064_p6 = scmp.eq.s32.totalorder (!%p205_p3), %s766_s18, 1 }
   0xb   : > { %286 = vst.msk [vmem:[#allocation4] sm:$0xff] (!%p205_p3), %vm281_vm0, %v956_v0  ;;  %287 = vst.msk [vmem:[#allocation4 + $0x8] sm:$0xff] (!%p205_p3), %vm281_vm0, %v956_v0 }
   0xc   : > { %vm1019_vm2 = vmpackc.low (!%p205_p3), %vm292_vm1, %vm292_vm1 }
  0x10   : > { %s245_s20 = scalar_select %p244_p4, %s946_s15, 1  ;;  %v291_v25 = vld [vmem:[#allocation2 + $0x8] sm:$0xff]  ;;  %v290_v27 = vld [vmem:[#allocation2] sm:$0xff] }
  0x11   : > { %v418_v26 = vld [vmem:[#allocation3 + $0x8] sm:$0xff]  ;;  %v417_v29 = vld [vmem:[#allocation3] sm:$0xff]  ;;  %858 = sst [smem:[#allocation5]] (%p268_p5), %s957_s5  ;;  %s900_s15 = scalar_lea.hbm %s1120_s3, 16 }
  0x12   : > { %s795_s21 = sshll.u32 %s245_s20, 4  ;;  %v505_v37 = vld [vmem:[#allocation4 + $0x8] sm:$0xff]  ;;  %v504_v38 = vld [vmem:[#allocation4] sm:$0xff]  ;;  %859 = sst [smem:[#allocation7]] (%p268_p5), %s957_s5 }
  0x13   : > { %s251_s24 = scalar_lea.vmem %s1117_s0, %s795_s21  ;;  %s259_s27 = scalar_lea.vmem %s1118_s1, %s795_s21 }
  0x14   : > { %v288_v2 = vld [vmem:[%s251_s24] sm:$0xff]  ;;  %v289_v3 = vld [vmem:[%s251_s24 + $0x8] sm:$0xff]  ;;  %s267_s30 = scalar_lea.vmem %s1119_s2, %s795_s21  ;;  %s591_s6 = sld [smem:[#allocation5]] }
  0x15   : > { %v379_v4 = vld [vmem:[%s259_s27] sm:$0xff]  ;;  %v832_v5 = vpack.c.bf16 %v289_v3, %v288_v2  ;;  %v380_v6 = vld [vmem:[%s259_s27 + $0x8] sm:$0xff]  ;;  %815 = vmatprep.mubr.msk.f32.mxu0 %vm292_vm1, %v288_v2  ;;  %p901_p7 = scmp.ne.s32.totalorder %s1120_s3, %s900_s15  ;;  %p906_p10 = scmp.lt.u32.totalorder %s900_s15, %s1120_s3 }
  0x16   : > { %822 = vmatprep.mubr.msk.f32.mxu1 %vm292_vm1, %v379_v4  ;;  %v381_v7 = vld [vmem:[%s267_s30] sm:$0xff]  ;;  %v382_v8 = vld [vmem:[%s267_s30 + $0x8] sm:$0xff]  ;;  %v838_v9 = vpack.c.bf16 %v380_v6, %v379_v4  ;;  %v383_v11 = vsub.f32 %v379_v4, %v288_v2  ;;  %v384_v12 = vsub.f32 %v380_v6, %v289_v3 }
  0x17   : > { %v844_v10 = vpack.c.bf16 %v382_v8, %v381_v7  ;;  %834 = vmatprep.subr.msk.bf16.mxu0 %vm1019_vm2, %v832_v5  ;;  %v400_v15 = vsub.f32 %v381_v7, %v288_v2  ;;  %v401_v16 = vsub.f32 %v382_v8, %v289_v3  ;;  %p902_p8 = pnand %p901_p7, %p1064_p6 }
  0x18   : > { %840 = vmatprep.subr.msk.bf16.mxu1 %vm1019_vm2, %v838_v9  ;;  %837 = vmatpush3.bf16.xpose.msk.msra.mxu0 %vm1019_vm2, %v832_v5  ;;  %v385_v13 = vand.u32 2147483647, %v383_v11  ;;  %v386_v14 = vand.u32 2147483647, %v384_v12 }
  0x19   : > { %843 = vmatpush3.bf16.xpose.msk.msra.mxu1 %vm1019_vm2, %v838_v9  ;;  %846 = vmatprep.subr.msk.bf16.mxu0 %vm1019_vm2, %v844_v10  ;;  %v402_v20 = vand.u32 2147483647, %v400_v15  ;;  %v403_v21 = vand.u32 2147483647, %v401_v16  ;;  %p903_p9 = pneg %p902_p8 }
  0x1a   : > { %v387_v17 = vsel %vm292_vm1, %v385_v13, 0.0  ;;  %v388_v18 = vsel %vm292_vm1, %v386_v14, 0.0 }
  0x1b   : > { %v389_v19 = vadd.f32 %v388_v18, %v387_v17  ;;  %v404_v22 = vsel %vm292_vm1, %v402_v20, 0.0  ;;  %v405_v23 = vsel %vm292_vm1, %v403_v21, 0.0  ;;  %p908_p11 = pnand %p906_p10, %p903_p9 }
  0x1c   : > { %v406_v24 = vadd.f32 %v405_v23, %v404_v22 }
  0x1d   : > { %390 = vadd.xlane.f32.xlu0 %v389_v19 }
  0x1f   : > { %816 = vmatmul.mubr.msk.f32.vlgmr.msra.gmra.mrb[0].mxu0 %vm292_vm1, %v289_v3 }
  0x20   : > { %823 = vmatmul.mubr.msk.f32.vlgmr.msra.gmra.mrb[0].mxu1 %vm292_vm1, %v380_v6  ;;  %849 = vmatpush3.bf16.xpose.msk.msra.mxu0 %vm1019_vm2, %v844_v10 }
  0x21   : > { %829 = vmatprep.mubr.msk.f32.mxu0 %vm292_vm1, %v381_v7  ;;  %407 = vadd.xlane.f32.xlu0 %v406_v24 }
  0x27   : > { %830 = vmatmul.mubr.msk.f32.vlgmr.msra.gmra.mrb[2].mxu0 %vm292_vm1, %v382_v8 }
  0xaa   : > { %v391_v5 = vpop.xlane.xlu0 %390 }
  0xab   : > { %v392_v6 = vrot.slane %v391_v5, 4 }
  0xad   : > { %v393_v7 = vadd.f32 %v392_v6, %v391_v5 }
  0xae   : > { %v408_v8 = vpop.xlane.xlu0 %407 }
  0xaf   : > { %v409_v9 = vrot.slane %v408_v8, 4  ;;  %v394_v10 = vrot.slane %v393_v7, 2 }
  0xb1   : > { %v410_v11 = vadd.f32 %v409_v9, %v408_v8  ;;  %v395_v14 = vadd.f32 %v394_v10, %v393_v7 }
  0xb3   : > { %v411_v12 = vrot.slane %v410_v11, 2  ;;  %v396_v15 = vrot.slane %v395_v14, 1 }
  0xb5   : > { %v412_v13 = vadd.f32 %v411_v12, %v410_v11  ;;  %v397_v17 = vadd.f32 %v396_v15, %v395_v14 }
  0xb7   : > { %v413_v16 = vrot.slane %v412_v13, 1  ;;  %850 = vpush %v397_v17 }
  0xb9   : > { %v414_v18 = vadd.f32 %v413_v16, %v412_v13 }
  0xbb   : > { %852 = vpush %v414_v18 }
  0xe8   : > { %s851_s7 = spop %850 }
  0xec   : > { %s853_s8 = spop %852 }
  0xed   : > { %s416_s9 = sadd.f32 %s853_s8, %s851_s7 }
  0xef   : > { %s592_s10 = smul.f32 0.00048828125, %s416_s9 }
  0xf1   : > { %s593_s11 = sadd.f32 %s592_s10, %s591_s6 }
  0xf2   : > { %v817_v28 = vpop.f32.mrb[0].mxu0 }
  0xf3   : > { %v375_v30 = vadd.f32 %v817_v28, %v291_v25  ;;  %v824_v31 = vpop.f32.mrb[0].mxu1  ;;  %v365_v32 = vpop.f32.mrb[1].mxu0  ;;  %595 = sst [smem:[#allocation5]] %s593_s11 }
  0xf4   : > { %v501_v33 = vadd.f32 %v824_v31, %v418_v26  ;;  %v374_v34 = vadd.f32 %v365_v32, %v290_v27  ;;  %v491_v35 = vpop.f32.mrb[1].mxu1 }
  0xf5   : > { %378 = vst.msk [vmem:[#allocation2 + $0x8] sm:$0xff] %vm281_vm0, %v375_v30  ;;  %v500_v36 = vadd.f32 %v491_v35, %v417_v29 }
  0xf6   : > { %503 = vst.msk [vmem:[#allocation3 + $0x8] sm:$0xff] %vm281_vm0, %v501_v33  ;;  %377 = vst.msk [vmem:[#allocation2] sm:$0xff] %vm281_vm0, %v374_v34 }
  0xf7   : > { %502 = vst.msk [vmem:[#allocation3] sm:$0xff] %vm281_vm0, %v500_v36 }
  0xfa   : > { %v831_v39 = vpop.f32.mrb[2].mxu0 }
  0xfb   : > { %v588_v40 = vadd.f32 %v831_v39, %v505_v37  ;;  %v578_v41 = vpop.f32.mrb[3].mxu0 }
  0xfc   : > { %v587_v42 = vadd.f32 %v578_v41, %v504_v38  ;;  %v600_v43 = vld [vmem:[#allocation2 + $0x8] sm:$0xff] }
  0xfd   : > { %590 = vst.msk [vmem:[#allocation4 + $0x8] sm:$0xff] %vm281_vm0, %v588_v40  ;;  %v599_v44 = vld [vmem:[#allocation2] sm:$0xff]  ;;  %v602_v45 = vmul.f32 0.0009765625, %v600_v43  ;;  %v604_v46 = vld [vmem:[#allocation3 + $0x8] sm:$0xff] }
  0xfe   : > { %589 = vst.msk [vmem:[#allocation4] sm:$0xff] %vm281_vm0, %v587_v42  ;;  %v601_v47 = vmul.f32 0.0009765625, %v599_v44  ;;  %v603_v48 = vld [vmem:[#allocation3] sm:$0xff]  ;;  %v606_v49 = vmul.f32 0.0009765625, %v604_v46 }
  0xff   : > { %v605_v50 = vmul.f32 0.0009765625, %v603_v48 }
 0x100   : > { %v612_v51 = vsub.f32 %v606_v49, %v602_v45 }
 0x101   : > { %v611_v52 = vsub.f32 %v605_v50, %v601_v47 }
 0x102   : > { %v614_v53 = vand.u32 2147483647, %v612_v51 }
 0x103   : > { %v613_v54 = vand.u32 2147483647, %v611_v52 }
 0x104   : > { %v616_v55 = vsel %vm281_vm0, %v614_v53, 0.0  ;;  %v608_v56 = vld [vmem:[#allocation4 + $0x8] sm:$0xff] }
 0x105   : > { %v615_v57 = vsel %vm281_vm0, %v613_v54, 0.0  ;;  %v607_v58 = vld [vmem:[#allocation4] sm:$0xff]  ;;  %v610_v59 = vmul.f32 0.0009765625, %v608_v56 }
 0x106   : > { %v617_v60 = vadd.f32 %v616_v55, %v615_v57  ;;  %v609_v61 = vmul.f32 0.0009765625, %v607_v58 }
 0x107   : > { %v629_v62 = vsub.f32 %v610_v59, %v602_v45 }
 0x108   : > { %618 = vadd.xlane.f32.xlu1 %v617_v60  ;;  %v628_v63 = vsub.f32 %v609_v61, %v601_v47 }
 0x109   : > { %v631_v0 = vand.u32 2147483647, %v629_v62 }
 0x10a   : > { %v630_v1 = vand.u32 2147483647, %v628_v63 }
 0x10b   : > { %v633_v2 = vsel %vm281_vm0, %v631_v0, 0.0 }
 0x10c   : > { %v632_v3 = vsel %vm281_vm0, %v630_v1, 0.0 }
 0x10d   : > { %v634_v4 = vadd.f32 %v633_v2, %v632_v3 }
 0x10f   : > { %635 = vadd.xlane.f32.xlu1 %v634_v4 }
 0x110   : > { %911 = shalt.err (!%p908_p11)
}
 0x111   : > { %s958_s18 = smov [#allocation5]   ;;  %s645_s26 = sld [smem:[#allocation7]] }
 0x112   : > { %861 = dma.smem_to_hbm (%p1064_p6), %s958_s18, 16, %s1120_s3, [#allocation6]  }
 0x113   : > { %s912_s8 = scalar_lea.hbm %s1121_s4, 16 }
 0x114   : > { %p913_p12 = scmp.ne.s32.totalorder %s1121_s4, %s912_s8  ;;  %p918_p1 = scmp.lt.u32.totalorder %s912_s8, %s1121_s4 }
 0x116   : > { %p914_p13 = pnand %p913_p12, %p1064_p6 }
 0x118   : > { %p915_p0 = pneg %p914_p13 }
 0x11a   : > { %p920_p2 = pnand %p918_p1, %p915_p0 }
 0x195   : > { %v619_v19 = vpop.xlane.xlu1 %618 }
 0x196   : > { %v620_v20 = vrot.slane %v619_v19, 4 }
 0x198   : > { %v621_v21 = vadd.f32 %v620_v20, %v619_v19 }
 0x19a   : > { %v622_v22 = vrot.slane %v621_v21, 2 }
 0x19c   : > { %v636_v23 = vpop.xlane.xlu1 %635  ;;  %v623_v24 = vadd.f32 %v622_v22, %v621_v21 }
 0x19d   : > { %v637_v25 = vrot.slane %v636_v23, 4 }
 0x19e   : > { %v624_v26 = vrot.slane %v623_v24, 1 }
 0x19f   : > { %v638_v27 = vadd.f32 %v637_v25, %v636_v23 }
 0x1a0   : > { %v625_v28 = vadd.f32 %v624_v26, %v623_v24 }
 0x1a1   : > { %v639_v29 = vrot.slane %v638_v27, 2 }
 0x1a2   : > { %854 = vpush %v625_v28 }
 0x1a3   : > { %v640_v30 = vadd.f32 %v639_v29, %v638_v27 }
 0x1a5   : > { %v641_v31 = vrot.slane %v640_v30, 1 }
 0x1a7   : > { %v642_v32 = vadd.f32 %v641_v31, %v640_v30 }
 0x1a9   : > { %856 = vpush %v642_v32 }
 0x1d3   : > { %s855_s27 = spop %854 }
 0x1da   : > { %s857_s28 = spop %856 }
 0x1db   : > { %s644_s29 = sadd.f32 %s857_s28, %s855_s27 }
 0x1dd   : > { %s646_s30 = smul.f32 0.001953125, %s644_s29 }
 0x1df   : > { %s647_s5 = sadd.f32 %s646_s30, %s645_s26 }
 0x1e1   : > { %649 = sst [smem:[#allocation7]] %s647_s5 }
 0x1e2   : > { %923 = shalt.err (!%p920_p2)
}
 0x1e3   : > { %s959_s14 = smov [#allocation7]  }
 0x1e4   : > { %863 = dma.smem_to_hbm (%p1064_p6), %s959_s14, 16, %s1121_s4, [#allocation8]  }
 0x1e5   : > { %937 = dma.done.wait (%p1064_p6), [#allocation6], 16  }
 0x1e6   : > { %939 = vsyncadd (%p1064_p6), [#allocation6], 4294967280 }
 0x1e7   : > { %941 = dma.done.wait (%p1064_p6), [#allocation8], 16  }
 0x1e8   : > { %943 = vsyncadd (%p1064_p6), [#allocation8], 4294967280 }
 0x1e9   : > { %676 = sfence }
 0x1ea PF: > { %s17_s17 = sadd.s32 1, %s954_s17   ;;  %s1125_s15 = smov %s950_s16 }
 0x1eb   : > { %p14_p3 = scmp.ge.s32.totalorder %s17_s17, 4   ;;  %s1126_s16 = smov %s1128_s19 }
 0x1ed   :  { %16 = sbr.rel (!%p14_p3) target bundleno = 3 (0x3), region = 89 }
 0x1f4   :  { %682 = vsyncpa [#allocation6], 1 }
 0x1f5   :  { %684 = vsyncpa [#allocation6 + $0x1], 1 }
 0x1f6   :  { %685 = vsyncpa [#allocation8], 1 }

</bundles_post_ra>
